<compile_context>
chip_gen: v7x
topology: tpu7x:2x2x1
jax: 0.10.0
libtpu: 0.0.40
codegen_flags: <defaults>
</compile_context>

<pallas_src>
import numpy as np

import jax
import jax.numpy as jnp
from jax import lax
from jax.experimental import pallas as pl
from jax.experimental.pallas import tpu as pltpu

LANE = 128          # padded class lanes for the final dense store
NEG = -1e30         # masks padded class lanes in log_softmax


def _round8(x):
    return (x + 7) // 8 * 8


# ------------------------------ fused kernel --------------------------------

def _build_kernel(cfg):
    layers = cfg["layers"]
    hf, fc_dil, len_h = cfg["hf"], cfg["fc_dil"], cfg["len_h"]

    def kernel(*refs):
        x_ref = refs[0]
        pos = 1
        layer_refs = []
        for lay in layers:
            n = 3 if lay["mask"] else 2
            layer_refs.append(refs[pos:pos + n])
            pos += n
        w1fc_ref, b1_ref, selg_ref, w2_ref, b2_ref, out_ref = refs[pos:]

        cur = x_ref[0]                      # (len_in, K1p) bf16, batch-stacked
        for li, lay in enumerate(layers):
            ks, pool, dil = lay["ks"], lay["pool"], lay["dil"]
            la, lo = lay["len_acc"], lay["len_act"]
            if lay["mask"]:
                wc_ref, bc_ref, mk_ref = layer_refs[li]
            else:
                wc_ref, bc_ref = layer_refs[li]

            # conv: pool x-phases * ks row-shifted matmuls (bf16 -> f32 acc);
            # horizontal pooling = elementwise max over phase accumulators.
            ph = None
            for px in range(pool):
                acc = None
                for dy in range(ks):
                    d = jnp.dot(cur[dil * dy: dil * dy + la, :],
                                wc_ref[px * ks + dy],
                                preferred_element_type=jnp.float32)
                    acc = d if acc is None else acc + d
                ph = acc if ph is None else jnp.maximum(ph, acc)

            # vertical pooling: shifted elementwise max (VPU)
            p = ph[0:lo, :]
            for py in range(1, pool):
                p = jnp.maximum(p, ph[dil * py: dil * py + lo, :])

            # bias + ReLU hoisted after the pooling max (exact: same per-lane
            # bias on every pooled candidate, ReLU is monotone).
            act = jnp.maximum(p + bc_ref[...], 0.0)
            if lay["mask"]:                 # zero padding rows for next conv
                act = act * mk_ref[...]
            cur = act.astype(jnp.bfloat16)

        # flatten (PyTorch (c,h,w) order folded into w1fc) + affine1: hf
        # row-shifted matmuls, then one tiny gather matmul picks row b*S.
        hacc = None
        for zo in range(hf):
            d = jnp.dot(cur[fc_dil * zo: fc_dil * zo + len_h, :], w1fc_ref[zo],
                        preferred_element_type=jnp.float32)
            hacc = d if hacc is None else hacc + d
        hg = jnp.dot(selg_ref[...], hacc, preferred_element_type=jnp.float32)
        h = jnp.maximum(hg + b1_ref[...], 0.0)

        logits = jnp.dot(h.astype(jnp.bfloat16), w2_ref[...],
                         preferred_element_type=jnp.float32) + b2_ref[...]
        z = logits - jnp.max(logits, axis=-1, keepdims=True)
        lse = jnp.log(jnp.sum(jnp.exp(z), axis=-1, keepdims=True))
        out_ref[...] = (z - lse).astype(out_ref.dtype)

    return kernel


# --------------------------- one-time layout prep ----------------------------

def prepare(params, conv_paras, input_dim, channels, classes, hd, b_tile=8):
    """Pack banded block-Toeplitz conv weights (with horizontal pooling phases
    and zero-padding folded in), lane biases, row masks, the permuted MLP
    weights and the batch-gather matrix.  Pure layout work, done once."""
    r8 = _round8
    L = len(conv_paras)
    kss = [cp["ks"] for cp in conv_paras]
    pools = [cp["pl"] for cp in conv_paras]
    ocs = [cp["oc"] for cp in conv_paras]
    pads = [k // 2 for k in kss]
    for k in kss:
        assert k % 2 == 1, "odd kernel sizes only"

    # row-space dilation of each layer inside the shared per-image row block
    dils, d = [], 1
    for p in pools:
        dils.append(d)
        d *= p
    fc_dil = d

    # spatial size entering each layer (square maps)
    Hin = [input_dim]
    for p in pools:
        Hin.append(Hin[-1] // p)
    hf = Hin[-1]

    # row-frame offsets per layer, lead rows, per-image row stride
    off = [0] * L
    for i in range(1, L):
        off[i] = off[i - 1] + dils[i] * pads[i]
    LEAD = off[L - 1]
    Hp1 = input_dim + 2 * pads[0]
    S = r8(LEAD + Hp1)

    # backward pass over the row-lengths every intermediate value must have
    len_h = r8((b_tile - 1) * S + 1)
    lens_act, lens_acc = [0] * L, [0] * L
    need = len_h + fc_dil * (hf - 1)
    for i in range(L - 1, -1, -1):
        lens_act[i] = r8(need)
        lens_acc[i] = r8(lens_act[i] + dils[i] * (pools[i] - 1))
        need = lens_acc[i] + dils[i] * (kss[i] - 1)
    len_in = r8(max(need, b_tile * S))
    k1p = r8(Hp1 * channels)

    flat_inputs, layers_cfg = [], []
    cin = channels
    for i in range(L):
        ks, pool, oc, pad, dil = kss[i], pools[i], ocs[i], pads[i], dils[i]
        Hi, Ho = Hin[i], Hin[i + 1]
        if i == 0:
            Wlane, xoff, Kp = Hi + 2 * pad, 0, k1p     # grid coords incl. pad
        else:
            Wlane, xoff, Kp = Hi, -pad, r8(Hi * cin)   # pooled-map coords
        N = Ho * oc
        Np = r8(N)

        w = np.asarray(params[f"conv{i}_w"], np.float32)       # (oc,cin,ks,ks)
        wt = np.zeros((pool * ks, Kp, Np), np.float32)
        for px in range(pool):
            for dy in range(ks):
                t = px * ks + dy
                for xo in range(Ho):
                    for dx in range(ks):
                        xin = pool * xo + px + dx + xoff
                        if xin < 0 or xin >= Wlane:
                            continue                   # horizontal zero pad
                        wt[t, xin * cin: xin * cin + cin,
                           xo * oc: xo * oc + oc] = w[:, :, dy, dx].T
        bias = np.zeros((1, Np), np.float32)
        bias[0, :N] = np.tile(np.asarray(params[f"conv{i}_b"], np.float32), Ho)
        flat_inputs += [jnp.asarray(wt, jnp.bfloat16), jnp.asarray(bias)]

        has_mask = i < L - 1
        if has_mask:       # 1 exactly at the valid pooled rows of this layer
            mask = np.zeros((lens_act[i], 1), np.float32)
            row0, step = LEAD - off[i], dil * pool
            for b in range(b_tile):
                for yo in range(Ho):
                    mask[b * S + row0 + step * yo, 0] = 1.0
            flat_inputs.append(jnp.asarray(mask))
        layers_cfg.append(dict(ks=ks, pool=pool, dil=dil,
                               len_acc=lens_acc[i], len_act=lens_act[i],
                               mask=has_mask))
        cin = oc

    # fc stage: PyTorch (c, h, w) flatten order folded into per-row-tap weights
    ocL = ocs[-1]
    NpL = r8(hf * ocL)
    w1 = np.asarray(params["w1"], np.float32)                  # (ocL*hf*hf, hd)
    w1fc = np.zeros((hf, NpL, hd), np.float32)
    for zo in range(hf):
        for wo in range(hf):
            for c in range(ocL):
                w1fc[zo, wo * ocL + c, :] = w1[c * hf * hf + zo * hf + wo, :]
    b1 = np.asarray(params["b1"], np.float32).reshape(1, hd)
    selg = np.zeros((b_tile, len_h), np.float32)               # row gather
    for b in range(b_tile):
        selg[b, b * S] = 1.0
    w2p = np.zeros((hd, LANE), np.float32)
    w2p[:, :classes] = np.asarray(params["w2"], np.float32)
    b2p = np.full((1, LANE), NEG, np.float32)
    b2p[0, :classes] = np.asarray(params["b2"], np.float32)
    flat_inputs += [jnp.asarray(w1fc, jnp.bfloat16), jnp.asarray(b1),
                    jnp.asarray(selg), jnp.asarray(w2p, jnp.bfloat16),
                    jnp.asarray(b2p)]

    cfg = dict(layers=layers_cfg, hf=hf, fc_dil=fc_dil, len_h=len_h,
               b_tile=b_tile, S=S, LEAD=LEAD, pad0=pads[0], k1p=k1p,
               len_in=len_in, classes=classes, input_dim=input_dim,
               channels=channels)
    return cfg, flat_inputs


# ------------------------------- forward pass --------------------------------

def cnn_forward(x_nchw, cfg, flat_inputs):
    n = x_nchw.shape[0]
    B, S, LEAD = cfg["b_tile"], cfg["S"], cfg["LEAD"]
    d, ch, pad0 = cfg["input_dim"], cfg["channels"], cfg["pad0"]
    Hp = d + 2 * pad0
    K1p, len_in = cfg["k1p"], cfg["len_in"]

    n_pad = -(-n // B) * B
    G = n_pad // B
    x = jnp.pad(x_nchw.astype(jnp.float32),
                ((0, n_pad - n), (0, 0), (0, 0), (0, 0)))
    x = jnp.transpose(x, (0, 2, 3, 1))                           # NHWC
    x = jnp.pad(x, ((0, 0), (pad0, pad0), (pad0, pad0), (0, 0)))
    x = x.reshape(n_pad, Hp, Hp * ch)                            # lanes = (x,c)
    x = jnp.pad(x, ((0, 0), (0, 0), (0, K1p - Hp * ch)))
    x = jnp.pad(x, ((0, 0), (LEAD, S - LEAD - Hp), (0, 0)))      # (n_pad,S,K1p)
    x = x.reshape(G, B * S, K1p)
    x = jnp.pad(x, ((0, 0), (0, len_in - B * S), (0, 0))).astype(jnp.bfloat16)

    in_specs = [pl.BlockSpec((1, len_in, K1p), lambda g: (g, 0, 0))]
    for arr in flat_inputs:     # weights / constants: resident, one block each
        in_specs.append(
            pl.BlockSpec(arr.shape, lambda g, _nd=arr.ndim: (0,) * _nd))

    out = pl.pallas_call(
        _build_kernel(cfg),
        out_shape=jax.ShapeDtypeStruct((G * B, LANE), jnp.float32),
        grid_spec=pltpu.PrefetchScalarGridSpec(
            num_scalar_prefetch=0,
            grid=(G,),                               # one step per image block
            in_specs=in_specs,
            out_specs=pl.BlockSpec((B, LANE), lambda g: (g, 0)),
        ),
        compiler_params=pltpu.CompilerParams(
            dimension_semantics=("parallel",),       # megacore / dual TC
            vmem_limit_bytes=32 * 1024 * 1024),
    )(x, *flat_inputs)
    return out[:n, :cfg["classes"]]                  # drop pad images / classes


# ----------------------- deterministic parameter init ------------------------

def init_params(key, conv_paras, input_dim, channels, classes, hd):
    params = {}
    cin = channels
    spatial = input_dim * input_dim
    keys = jax.random.split(key, 2 * len(conv_paras) + 4)
    ki = 0
    for i, cp in enumerate(conv_paras):
        ks, oc = cp["ks"], cp["oc"]
        params[f"conv{i}_w"] = 0.2 * jax.random.normal(
            keys[ki], (oc, cin, ks, ks), jnp.float32); ki += 1
        params[f"conv{i}_b"] = 0.1 * jax.random.normal(
            keys[ki], (oc,), jnp.float32); ki += 1
        cin = oc
        spatial //= cp["pl"] ** 2
    conv_output_dim = spatial * conv_paras[-1]["oc"]
    params["w1"] = 0.1 * jax.random.normal(
        keys[ki], (conv_output_dim, hd), jnp.float32); ki += 1
    params["b1"] = 0.1 * jax.random.normal(keys[ki], (hd,), jnp.float32); ki += 1
    params["w2"] = 0.1 * jax.random.normal(
        keys[ki], (hd, classes), jnp.float32); ki += 1
    params["b2"] = 0.1 * jax.random.normal(keys[ki], (classes,), jnp.float32)
    return params, conv_output_dim


# --------------------------- pure-JAX reference -------------------------------

def ref_forward(x_nchw, params, conv_paras):
    x = x_nchw
    for i, cp in enumerate(conv_paras):
        ks, pool = cp["ks"], cp["pl"]
        pad = ks // 2
        wgt, b = params[f"conv{i}_w"], params[f"conv{i}_b"]
        y = lax.conv_general_dilated(
            x, wgt, (1, 1), [(pad, pad), (pad, pad)],
            dimension_numbers=("NCHW", "OIHW", "NCHW"))
        y = jnp.maximum(y + b[None, :, None, None], 0.0)
        n, c, h, w = y.shape
        x = y.reshape(n, c, h // pool, pool, w // pool, pool).max(axis=(3, 5))
    n = x.shape[0]
    x = x.reshape(n, -1)
    h1 = jnp.maximum(x @ params["w1"] + params["b1"], 0.0)
    logits = h1 @ params["w2"] + params["b2"]
    return jax.nn.log_softmax(logits, axis=1)


if __name__ == "__main__":
    conv_paras = [{"oc": 4, "ks": 3, "pl": 2}, {"oc": 8, "ks": 3, "pl": 2}]
    input_dim, channels, classes, hd = 16, 1, 10, 32
    batch = 2

    key = jax.random.PRNGKey(0)
    kx, kp = jax.random.split(key)
    x = jax.random.normal(kx, (batch, channels, input_dim, input_dim),
                          jnp.float32)
    params, conv_output_dim = init_params(kp, conv_paras, input_dim, channels,
                                          classes, hd)

    cfg, flat_inputs = prepare(params, conv_paras, input_dim, channels,
                               classes, hd, b_tile=8)

    out = jax.block_until_ready(cnn_forward(x, cfg, flat_inputs))
    assert out.shape == (batch, classes)

    ref = jax.block_until_ready(ref_forward(x, params, conv_paras))
    max_err = float(jnp.max(jnp.abs(out - ref)))
    assert max_err < 5e-2, f"max abs error {max_err}"
    print("KERNEL_OK")
</pallas_src>

<mosaic_0001>
module attributes {stable_mosaic.version = 11 : i64} {
  func.func @kernel(%arg0: i32, %arg1: memref<1x224x24xbf16, #tpu.memory_space<vmem>>, %arg2: memref<6x24x32xbf16, #tpu.memory_space<vmem>>, %arg3: memref<1x32xf32, #tpu.memory_space<vmem>>, %arg4: memref<208x1xf32, #tpu.memory_space<vmem>>, %arg5: memref<6x32x32xbf16, #tpu.memory_space<vmem>>, %arg6: memref<1x32xf32, #tpu.memory_space<vmem>>, %arg7: memref<4x32x32xbf16, #tpu.memory_space<vmem>>, %arg8: memref<1x32xf32, #tpu.memory_space<vmem>>, %arg9: memref<8x176xf32, #tpu.memory_space<vmem>>, %arg10: memref<32x128xbf16, #tpu.memory_space<vmem>>, %arg11: memref<1x128xf32, #tpu.memory_space<vmem>>, %arg12: memref<8x128xf32, #tpu.memory_space<vmem>>) attributes {dimension_semantics = [#tpu.dimension_semantics<parallel>], iteration_bounds = array<i64: 1>, scalar_prefetch = 0 : i64, scratch_operands = 0 : i64, tpu.core_type = #tpu.core_type<tc>, window_params = [{transform_indices = @transform_0, window_bounds = array<i64: 1, 224, 24>}, {pipeline_mode = #tpu.pipeline_mode<synchronous>, transform_indices = @transform_1, window_bounds = array<i64: 6, 24, 32>}, {pipeline_mode = #tpu.pipeline_mode<synchronous>, transform_indices = @transform_2, window_bounds = array<i64: 1, 32>}, {pipeline_mode = #tpu.pipeline_mode<synchronous>, transform_indices = @transform_3, window_bounds = array<i64: 208, 1>}, {pipeline_mode = #tpu.pipeline_mode<synchronous>, transform_indices = @transform_4, window_bounds = array<i64: 6, 32, 32>}, {pipeline_mode = #tpu.pipeline_mode<synchronous>, transform_indices = @transform_5, window_bounds = array<i64: 1, 32>}, {pipeline_mode = #tpu.pipeline_mode<synchronous>, transform_indices = @transform_6, window_bounds = array<i64: 4, 32, 32>}, {pipeline_mode = #tpu.pipeline_mode<synchronous>, transform_indices = @transform_7, window_bounds = array<i64: 1, 32>}, {pipeline_mode = #tpu.pipeline_mode<synchronous>, transform_indices = @transform_8, window_bounds = array<i64: 8, 176>}, {pipeline_mode = #tpu.pipeline_mode<synchronous>, transform_indices = @transform_9, window_bounds = array<i64: 32, 128>}, {pipeline_mode = #tpu.pipeline_mode<synchronous>, transform_indices = @transform_10, window_bounds = array<i64: 1, 128>}, {transform_indices = @transform_11, window_bounds = array<i64: 8, 128>}]} {
    %c0 = arith.constant 0 : index
    %c0_0 = arith.constant 0 : index
    %c0_1 = arith.constant 0 : index
    %0 = vector.load %arg1[%c0, %c0_0, %c0_1] : memref<1x224x24xbf16, #tpu.memory_space<vmem>>, vector<1x224x24xbf16>
    %1 = vector.shape_cast %0 : vector<1x224x24xbf16> to vector<224x24xbf16>
    %2 = vector.extract_strided_slice %1 {offsets = [0, 0], sizes = [216, 24], strides = [1, 1]} : vector<224x24xbf16> to vector<216x24xbf16>
    %c0_2 = arith.constant 0 : index
    %c0_3 = arith.constant 0 : index
    %c0_4 = arith.constant 0 : index
    %3 = vector.load %arg2[%c0_2, %c0_3, %c0_4] : memref<6x24x32xbf16, #tpu.memory_space<vmem>>, vector<1x24x32xbf16>
    %4 = vector.shape_cast %3 : vector<1x24x32xbf16> to vector<24x32xbf16>
    %cst = arith.constant dense<0.000000e+00> : vector<216x32xf32>
    %5 = tpu.matmul %2, %4, %cst {dimension_numbers = #tpu.dot_dimension_numbers<[1], [0], [0], [1], [0, 0, 1, 1], [], []>} : vector<216x24xbf16>, vector<24x32xbf16>, vector<216x32xf32> -> vector<216x32xf32>
    %6 = vector.extract_strided_slice %1 {offsets = [1, 0], sizes = [216, 24], strides = [1, 1]} : vector<224x24xbf16> to vector<216x24xbf16>
    %c1 = arith.constant 1 : index
    %c0_5 = arith.constant 0 : index
    %c0_6 = arith.constant 0 : index
    %7 = vector.load %arg2[%c1, %c0_5, %c0_6] : memref<6x24x32xbf16, #tpu.memory_space<vmem>>, vector<1x24x32xbf16>
    %8 = vector.shape_cast %7 : vector<1x24x32xbf16> to vector<24x32xbf16>
    %cst_7 = arith.constant dense<0.000000e+00> : vector<216x32xf32>
    %9 = tpu.matmul %6, %8, %cst_7 {dimension_numbers = #tpu.dot_dimension_numbers<[1], [0], [0], [1], [0, 0, 1, 1], [], []>} : vector<216x24xbf16>, vector<24x32xbf16>, vector<216x32xf32> -> vector<216x32xf32>
    %10 = arith.addf %5, %9 : vector<216x32xf32>
    %11 = vector.extract_strided_slice %1 {offsets = [2, 0], sizes = [216, 24], strides = [1, 1]} : vector<224x24xbf16> to vector<216x24xbf16>
    %c2 = arith.constant 2 : index
    %c0_8 = arith.constant 0 : index
    %c0_9 = arith.constant 0 : index
    %12 = vector.load %arg2[%c2, %c0_8, %c0_9] : memref<6x24x32xbf16, #tpu.memory_space<vmem>>, vector<1x24x32xbf16>
    %13 = vector.shape_cast %12 : vector<1x24x32xbf16> to vector<24x32xbf16>
    %cst_10 = arith.constant dense<0.000000e+00> : vector<216x32xf32>
    %14 = tpu.matmul %11, %13, %cst_10 {dimension_numbers = #tpu.dot_dimension_numbers<[1], [0], [0], [1], [0, 0, 1, 1], [], []>} : vector<216x24xbf16>, vector<24x32xbf16>, vector<216x32xf32> -> vector<216x32xf32>
    %15 = arith.addf %10, %14 : vector<216x32xf32>
    %16 = vector.extract_strided_slice %1 {offsets = [0, 0], sizes = [216, 24], strides = [1, 1]} : vector<224x24xbf16> to vector<216x24xbf16>
    %c3 = arith.constant 3 : index
    %c0_11 = arith.constant 0 : index
    %c0_12 = arith.constant 0 : index
    %17 = vector.load %arg2[%c3, %c0_11, %c0_12] : memref<6x24x32xbf16, #tpu.memory_space<vmem>>, vector<1x24x32xbf16>
    %18 = vector.shape_cast %17 : vector<1x24x32xbf16> to vector<24x32xbf16>
    %cst_13 = arith.constant dense<0.000000e+00> : vector<216x32xf32>
    %19 = tpu.matmul %16, %18, %cst_13 {dimension_numbers = #tpu.dot_dimension_numbers<[1], [0], [0], [1], [0, 0, 1, 1], [], []>} : vector<216x24xbf16>, vector<24x32xbf16>, vector<216x32xf32> -> vector<216x32xf32>
    %20 = vector.extract_strided_slice %1 {offsets = [1, 0], sizes = [216, 24], strides = [1, 1]} : vector<224x24xbf16> to vector<216x24xbf16>
    %c4 = arith.constant 4 : index
    %c0_14 = arith.constant 0 : index
    %c0_15 = arith.constant 0 : index
    %21 = vector.load %arg2[%c4, %c0_14, %c0_15] : memref<6x24x32xbf16, #tpu.memory_space<vmem>>, vector<1x24x32xbf16>
    %22 = vector.shape_cast %21 : vector<1x24x32xbf16> to vector<24x32xbf16>
    %cst_16 = arith.constant dense<0.000000e+00> : vector<216x32xf32>
    %23 = tpu.matmul %20, %22, %cst_16 {dimension_numbers = #tpu.dot_dimension_numbers<[1], [0], [0], [1], [0, 0, 1, 1], [], []>} : vector<216x24xbf16>, vector<24x32xbf16>, vector<216x32xf32> -> vector<216x32xf32>
    %24 = arith.addf %19, %23 : vector<216x32xf32>
    %25 = vector.extract_strided_slice %1 {offsets = [2, 0], sizes = [216, 24], strides = [1, 1]} : vector<224x24xbf16> to vector<216x24xbf16>
    %c5 = arith.constant 5 : index
    %c0_17 = arith.constant 0 : index
    %c0_18 = arith.constant 0 : index
    %26 = vector.load %arg2[%c5, %c0_17, %c0_18] : memref<6x24x32xbf16, #tpu.memory_space<vmem>>, vector<1x24x32xbf16>
    %27 = vector.shape_cast %26 : vector<1x24x32xbf16> to vector<24x32xbf16>
    %cst_19 = arith.constant dense<0.000000e+00> : vector<216x32xf32>
    %28 = tpu.matmul %25, %27, %cst_19 {dimension_numbers = #tpu.dot_dimension_numbers<[1], [0], [0], [1], [0, 0, 1, 1], [], []>} : vector<216x24xbf16>, vector<24x32xbf16>, vector<216x32xf32> -> vector<216x32xf32>
    %29 = arith.addf %24, %28 : vector<216x32xf32>
    %30 = arith.maximumf %15, %29 : vector<216x32xf32>
    %31 = vector.extract_strided_slice %30 {offsets = [0, 0], sizes = [208, 32], strides = [1, 1]} : vector<216x32xf32> to vector<208x32xf32>
    %32 = vector.extract_strided_slice %30 {offsets = [1, 0], sizes = [208, 32], strides = [1, 1]} : vector<216x32xf32> to vector<208x32xf32>
    %33 = arith.maximumf %31, %32 : vector<208x32xf32>
    %c0_20 = arith.constant 0 : index
    %c0_21 = arith.constant 0 : index
    %34 = vector.load %arg3[%c0_20, %c0_21] : memref<1x32xf32, #tpu.memory_space<vmem>>, vector<1x32xf32>
    %35 = vector.broadcast %34 : vector<1x32xf32> to vector<208x32xf32>
    %36 = arith.addf %33, %35 : vector<208x32xf32>
    %cst_22 = arith.constant 0.000000e+00 : f32
    %37 = vector.broadcast %cst_22 : f32 to vector<208x32xf32>
    %38 = arith.maximumf %36, %37 : vector<208x32xf32>
    %c0_23 = arith.constant 0 : index
    %c0_24 = arith.constant 0 : index
    %39 = vector.load %arg4[%c0_23, %c0_24] : memref<208x1xf32, #tpu.memory_space<vmem>>, vector<208x1xf32>
    %40 = vector.broadcast %39 : vector<208x1xf32> to vector<208x32xf32>
    %41 = arith.mulf %38, %40 : vector<208x32xf32>
    %42 = arith.truncf %41 : vector<208x32xf32> to vector<208x32xbf16>
    %43 = vector.extract_strided_slice %42 {offsets = [0, 0], sizes = [200, 32], strides = [1, 1]} : vector<208x32xbf16> to vector<200x32xbf16>
    %c0_25 = arith.constant 0 : index
    %c0_26 = arith.constant 0 : index
    %c0_27 = arith.constant 0 : index
    %44 = vector.load %arg5[%c0_25, %c0_26, %c0_27] : memref<6x32x32xbf16, #tpu.memory_space<vmem>>, vector<1x32x32xbf16>
    %45 = vector.shape_cast %44 : vector<1x32x32xbf16> to vector<32x32xbf16>
    %cst_28 = arith.constant dense<0.000000e+00> : vector<200x32xf32>
    %46 = tpu.matmul %43, %45, %cst_28 {dimension_numbers = #tpu.dot_dimension_numbers<[1], [0], [0], [1], [0, 0, 1, 1], [], []>} : vector<200x32xbf16>, vector<32x32xbf16>, vector<200x32xf32> -> vector<200x32xf32>
    %47 = vector.extract_strided_slice %42 {offsets = [2, 0], sizes = [200, 32], strides = [1, 1]} : vector<208x32xbf16> to vector<200x32xbf16>
    %c1_29 = arith.constant 1 : index
    %c0_30 = arith.constant 0 : index
    %c0_31 = arith.constant 0 : index
    %48 = vector.load %arg5[%c1_29, %c0_30, %c0_31] : memref<6x32x32xbf16, #tpu.memory_space<vmem>>, vector<1x32x32xbf16>
    %49 = vector.shape_cast %48 : vector<1x32x32xbf16> to vector<32x32xbf16>
    %cst_32 = arith.constant dense<0.000000e+00> : vector<200x32xf32>
    %50 = tpu.matmul %47, %49, %cst_32 {dimension_numbers = #tpu.dot_dimension_numbers<[1], [0], [0], [1], [0, 0, 1, 1], [], []>} : vector<200x32xbf16>, vector<32x32xbf16>, vector<200x32xf32> -> vector<200x32xf32>
    %51 = arith.addf %46, %50 : vector<200x32xf32>
    %52 = vector.extract_strided_slice %42 {offsets = [4, 0], sizes = [200, 32], strides = [1, 1]} : vector<208x32xbf16> to vector<200x32xbf16>
    %c2_33 = arith.constant 2 : index
    %c0_34 = arith.constant 0 : index
    %c0_35 = arith.constant 0 : index
    %53 = vector.load %arg5[%c2_33, %c0_34, %c0_35] : memref<6x32x32xbf16, #tpu.memory_space<vmem>>, vector<1x32x32xbf16>
    %54 = vector.shape_cast %53 : vector<1x32x32xbf16> to vector<32x32xbf16>
    %cst_36 = arith.constant dense<0.000000e+00> : vector<200x32xf32>
    %55 = tpu.matmul %52, %54, %cst_36 {dimension_numbers = #tpu.dot_dimension_numbers<[1], [0], [0], [1], [0, 0, 1, 1], [], []>} : vector<200x32xbf16>, vector<32x32xbf16>, vector<200x32xf32> -> vector<200x32xf32>
    %56 = arith.addf %51, %55 : vector<200x32xf32>
    %57 = vector.extract_strided_slice %42 {offsets = [0, 0], sizes = [200, 32], strides = [1, 1]} : vector<208x32xbf16> to vector<200x32xbf16>
    %c3_37 = arith.constant 3 : index
    %c0_38 = arith.constant 0 : index
    %c0_39 = arith.constant 0 : index
    %58 = vector.load %arg5[%c3_37, %c0_38, %c0_39] : memref<6x32x32xbf16, #tpu.memory_space<vmem>>, vector<1x32x32xbf16>
    %59 = vector.shape_cast %58 : vector<1x32x32xbf16> to vector<32x32xbf16>
    %cst_40 = arith.constant dense<0.000000e+00> : vector<200x32xf32>
    %60 = tpu.matmul %57, %59, %cst_40 {dimension_numbers = #tpu.dot_dimension_numbers<[1], [0], [0], [1], [0, 0, 1, 1], [], []>} : vector<200x32xbf16>, vector<32x32xbf16>, vector<200x32xf32> -> vector<200x32xf32>
    %61 = vector.extract_strided_slice %42 {offsets = [2, 0], sizes = [200, 32], strides = [1, 1]} : vector<208x32xbf16> to vector<200x32xbf16>
    %c4_41 = arith.constant 4 : index
    %c0_42 = arith.constant 0 : index
    %c0_43 = arith.constant 0 : index
    %62 = vector.load %arg5[%c4_41, %c0_42, %c0_43] : memref<6x32x32xbf16, #tpu.memory_space<vmem>>, vector<1x32x32xbf16>
    %63 = vector.shape_cast %62 : vector<1x32x32xbf16> to vector<32x32xbf16>
    %cst_44 = arith.constant dense<0.000000e+00> : vector<200x32xf32>
    %64 = tpu.matmul %61, %63, %cst_44 {dimension_numbers = #tpu.dot_dimension_numbers<[1], [0], [0], [1], [0, 0, 1, 1], [], []>} : vector<200x32xbf16>, vector<32x32xbf16>, vector<200x32xf32> -> vector<200x32xf32>
    %65 = arith.addf %60, %64 : vector<200x32xf32>
    %66 = vector.extract_strided_slice %42 {offsets = [4, 0], sizes = [200, 32], strides = [1, 1]} : vector<208x32xbf16> to vector<200x32xbf16>
    %c5_45 = arith.constant 5 : index
    %c0_46 = arith.constant 0 : index
    %c0_47 = arith.constant 0 : index
    %67 = vector.load %arg5[%c5_45, %c0_46, %c0_47] : memref<6x32x32xbf16, #tpu.memory_space<vmem>>, vector<1x32x32xbf16>
    %68 = vector.shape_cast %67 : vector<1x32x32xbf16> to vector<32x32xbf16>
    %cst_48 = arith.constant dense<0.000000e+00> : vector<200x32xf32>
    %69 = tpu.matmul %66, %68, %cst_48 {dimension_numbers = #tpu.dot_dimension_numbers<[1], [0], [0], [1], [0, 0, 1, 1], [], []>} : vector<200x32xbf16>, vector<32x32xbf16>, vector<200x32xf32> -> vector<200x32xf32>
    %70 = arith.addf %65, %69 : vector<200x32xf32>
    %71 = arith.maximumf %56, %70 : vector<200x32xf32>
    %72 = vector.extract_strided_slice %71 {offsets = [0, 0], sizes = [192, 32], strides = [1, 1]} : vector<200x32xf32> to vector<192x32xf32>
    %73 = vector.extract_strided_slice %71 {offsets = [2, 0], sizes = [192, 32], strides = [1, 1]} : vector<200x32xf32> to vector<192x32xf32>
    %74 = arith.maximumf %72, %73 : vector<192x32xf32>
    %c0_49 = arith.constant 0 : index
    %c0_50 = arith.constant 0 : index
    %75 = vector.load %arg6[%c0_49, %c0_50] : memref<1x32xf32, #tpu.memory_space<vmem>>, vector<1x32xf32>
    %76 = vector.broadcast %75 : vector<1x32xf32> to vector<192x32xf32>
    %77 = arith.addf %74, %76 : vector<192x32xf32>
    %cst_51 = arith.constant 0.000000e+00 : f32
    %78 = vector.broadcast %cst_51 : f32 to vector<192x32xf32>
    %79 = arith.maximumf %77, %78 : vector<192x32xf32>
    %80 = arith.truncf %79 : vector<192x32xf32> to vector<192x32xbf16>
    %81 = vector.extract_strided_slice %80 {offsets = [0, 0], sizes = [176, 32], strides = [1, 1]} : vector<192x32xbf16> to vector<176x32xbf16>
    %c0_52 = arith.constant 0 : index
    %c0_53 = arith.constant 0 : index
    %c0_54 = arith.constant 0 : index
    %82 = vector.load %arg7[%c0_52, %c0_53, %c0_54] : memref<4x32x32xbf16, #tpu.memory_space<vmem>>, vector<1x32x32xbf16>
    %83 = vector.shape_cast %82 : vector<1x32x32xbf16> to vector<32x32xbf16>
    %cst_55 = arith.constant dense<0.000000e+00> : vector<176x32xf32>
    %84 = tpu.matmul %81, %83, %cst_55 {dimension_numbers = #tpu.dot_dimension_numbers<[1], [0], [0], [1], [0, 0, 1, 1], [], []>} : vector<176x32xbf16>, vector<32x32xbf16>, vector<176x32xf32> -> vector<176x32xf32>
    %85 = vector.extract_strided_slice %80 {offsets = [4, 0], sizes = [176, 32], strides = [1, 1]} : vector<192x32xbf16> to vector<176x32xbf16>
    %c1_56 = arith.constant 1 : index
    %c0_57 = arith.constant 0 : index
    %c0_58 = arith.constant 0 : index
    %86 = vector.load %arg7[%c1_56, %c0_57, %c0_58] : memref<4x32x32xbf16, #tpu.memory_space<vmem>>, vector<1x32x32xbf16>
    %87 = vector.shape_cast %86 : vector<1x32x32xbf16> to vector<32x32xbf16>
    %cst_59 = arith.constant dense<0.000000e+00> : vector<176x32xf32>
    %88 = tpu.matmul %85, %87, %cst_59 {dimension_numbers = #tpu.dot_dimension_numbers<[1], [0], [0], [1], [0, 0, 1, 1], [], []>} : vector<176x32xbf16>, vector<32x32xbf16>, vector<176x32xf32> -> vector<176x32xf32>
    %89 = arith.addf %84, %88 : vector<176x32xf32>
    %90 = vector.extract_strided_slice %80 {offsets = [8, 0], sizes = [176, 32], strides = [1, 1]} : vector<192x32xbf16> to vector<176x32xbf16>
    %c2_60 = arith.constant 2 : index
    %c0_61 = arith.constant 0 : index
    %c0_62 = arith.constant 0 : index
    %91 = vector.load %arg7[%c2_60, %c0_61, %c0_62] : memref<4x32x32xbf16, #tpu.memory_space<vmem>>, vector<1x32x32xbf16>
    %92 = vector.shape_cast %91 : vector<1x32x32xbf16> to vector<32x32xbf16>
    %cst_63 = arith.constant dense<0.000000e+00> : vector<176x32xf32>
    %93 = tpu.matmul %90, %92, %cst_63 {dimension_numbers = #tpu.dot_dimension_numbers<[1], [0], [0], [1], [0, 0, 1, 1], [], []>} : vector<176x32xbf16>, vector<32x32xbf16>, vector<176x32xf32> -> vector<176x32xf32>
    %94 = arith.addf %89, %93 : vector<176x32xf32>
    %95 = vector.extract_strided_slice %80 {offsets = [12, 0], sizes = [176, 32], strides = [1, 1]} : vector<192x32xbf16> to vector<176x32xbf16>
    %c3_64 = arith.constant 3 : index
    %c0_65 = arith.constant 0 : index
    %c0_66 = arith.constant 0 : index
    %96 = vector.load %arg7[%c3_64, %c0_65, %c0_66] : memref<4x32x32xbf16, #tpu.memory_space<vmem>>, vector<1x32x32xbf16>
    %97 = vector.shape_cast %96 : vector<1x32x32xbf16> to vector<32x32xbf16>
    %cst_67 = arith.constant dense<0.000000e+00> : vector<176x32xf32>
    %98 = tpu.matmul %95, %97, %cst_67 {dimension_numbers = #tpu.dot_dimension_numbers<[1], [0], [0], [1], [0, 0, 1, 1], [], []>} : vector<176x32xbf16>, vector<32x32xbf16>, vector<176x32xf32> -> vector<176x32xf32>
    %99 = arith.addf %94, %98 : vector<176x32xf32>
    %c0_68 = arith.constant 0 : index
    %c0_69 = arith.constant 0 : index
    %100 = vector.load %arg9[%c0_68, %c0_69] : memref<8x176xf32, #tpu.memory_space<vmem>>, vector<8x176xf32>
    %cst_70 = arith.constant dense<0.000000e+00> : vector<8x32xf32>
    %101 = tpu.matmul %100, %99, %cst_70 {dimension_numbers = #tpu.dot_dimension_numbers<[1], [0], [0], [1], [0, 0, 1, 1], [], []>} : vector<8x176xf32>, vector<176x32xf32>, vector<8x32xf32> -> vector<8x32xf32>
    %c0_71 = arith.constant 0 : index
    %c0_72 = arith.constant 0 : index
    %102 = vector.load %arg8[%c0_71, %c0_72] : memref<1x32xf32, #tpu.memory_space<vmem>>, vector<1x32xf32>
    %103 = vector.broadcast %102 : vector<1x32xf32> to vector<8x32xf32>
    %104 = arith.addf %101, %103 : vector<8x32xf32>
    %cst_73 = arith.constant 0.000000e+00 : f32
    %105 = vector.broadcast %cst_73 : f32 to vector<8x32xf32>
    %106 = arith.maximumf %104, %105 : vector<8x32xf32>
    %107 = arith.truncf %106 : vector<8x32xf32> to vector<8x32xbf16>
    %c0_74 = arith.constant 0 : index
    %c0_75 = arith.constant 0 : index
    %108 = vector.load %arg10[%c0_74, %c0_75] : memref<32x128xbf16, #tpu.memory_space<vmem>>, vector<32x128xbf16>
    %cst_76 = arith.constant dense<0.000000e+00> : vector<8x128xf32>
    %109 = tpu.matmul %107, %108, %cst_76 {dimension_numbers = #tpu.dot_dimension_numbers<[1], [0], [0], [1], [0, 0, 1, 1], [], []>} : vector<8x32xbf16>, vector<32x128xbf16>, vector<8x128xf32> -> vector<8x128xf32>
    %c0_77 = arith.constant 0 : index
    %c0_78 = arith.constant 0 : index
    %110 = vector.load %arg11[%c0_77, %c0_78] : memref<1x128xf32, #tpu.memory_space<vmem>>, vector<1x128xf32>
    %111 = vector.broadcast %110 : vector<1x128xf32> to vector<8x128xf32>
    %112 = arith.addf %109, %111 : vector<8x128xf32>
    %cst_79 = arith.constant dense<0xFF800000> : vector<8xf32>
    %113 = vector.multi_reduction <maximumf>, %112, %cst_79 [1] : vector<8x128xf32> to vector<8xf32>
    %114 = vector.shape_cast %113 : vector<8xf32> to vector<8x1xf32>
    %115 = vector.broadcast %114 : vector<8x1xf32> to vector<8x128xf32>
    %116 = arith.subf %112, %115 : vector<8x128xf32>
    %117 = math.exp %116 : vector<8x128xf32>
    %cst_80 = arith.constant dense<0.000000e+00> : vector<8xf32>
    %118 = vector.multi_reduction <add>, %117, %cst_80 [1] : vector<8x128xf32> to vector<8xf32>
    %119 = vector.shape_cast %118 : vector<8xf32> to vector<8x1xf32>
    %120 = math.log %119 : vector<8x1xf32>
    %121 = vector.broadcast %120 : vector<8x1xf32> to vector<8x128xf32>
    %122 = arith.subf %116, %121 : vector<8x128xf32>
    %c0_81 = arith.constant 0 : index
    %c0_82 = arith.constant 0 : index
    %123 = vector.load %arg12[%c0_81, %c0_82] : memref<8x128xf32, #tpu.memory_space<vmem>>, vector<8x128xf32>
    tpu.vector_store %arg12[%c0_81, %c0_82], %122 {strides = array<i32>} : memref<8x128xf32, #tpu.memory_space<vmem>>, vector<8x128xf32>,
    return
  }
  func.func @transform_0(%arg0: i32) -> (i32, i32, i32) {
    %c0_i32 = arith.constant 0 : i32
    %c0_i32_0 = arith.constant 0 : i32
    %c0_i32_1 = arith.constant 0 : i32
    return %arg0, %c0_i32, %c0_i32_0 : i32, i32, i32
  }
  func.func @transform_1(%arg0: i32) -> (i32, i32, i32) {
    %c0_i32 = arith.constant 0 : i32
    %c0_i32_0 = arith.constant 0 : i32
    %c0_i32_1 = arith.constant 0 : i32
    %c0_i32_2 = arith.constant 0 : i32
    return %c0_i32, %c0_i32_0, %c0_i32_1 : i32, i32, i32
  }
  func.func @transform_2(%arg0: i32) -> (i32, i32) {
    %c0_i32 = arith.constant 0 : i32
    %c0_i32_0 = arith.constant 0 : i32
    %c0_i32_1 = arith.constant 0 : i32
    return %c0_i32, %c0_i32_0 : i32, i32
  }
  func.func @transform_3(%arg0: i32) -> (i32, i32) {
    %c0_i32 = arith.constant 0 : i32
    %c0_i32_0 = arith.constant 0 : i32
    %c0_i32_1 = arith.constant 0 : i32
    return %c0_i32, %c0_i32_0 : i32, i32
  }
  func.func @transform_4(%arg0: i32) -> (i32, i32, i32) {
    %c0_i32 = arith.constant 0 : i32
    %c0_i32_0 = arith.constant 0 : i32
    %c0_i32_1 = arith.constant 0 : i32
    %c0_i32_2 = arith.constant 0 : i32
    return %c0_i32, %c0_i32_0, %c0_i32_1 : i32, i32, i32
  }
  func.func @transform_5(%arg0: i32) -> (i32, i32) {
    %c0_i32 = arith.constant 0 : i32
    %c0_i32_0 = arith.constant 0 : i32
    %c0_i32_1 = arith.constant 0 : i32
    return %c0_i32, %c0_i32_0 : i32, i32
  }
  func.func @transform_6(%arg0: i32) -> (i32, i32, i32) {
    %c0_i32 = arith.constant 0 : i32
    %c0_i32_0 = arith.constant 0 : i32
    %c0_i32_1 = arith.constant 0 : i32
    %c0_i32_2 = arith.constant 0 : i32
    return %c0_i32, %c0_i32_0, %c0_i32_1 : i32, i32, i32
  }
  func.func @transform_7(%arg0: i32) -> (i32, i32) {
    %c0_i32 = arith.constant 0 : i32
    %c0_i32_0 = arith.constant 0 : i32
    %c0_i32_1 = arith.constant 0 : i32
    return %c0_i32, %c0_i32_0 : i32, i32
  }
  func.func @transform_8(%arg0: i32) -> (i32, i32) {
    %c0_i32 = arith.constant 0 : i32
    %c0_i32_0 = arith.constant 0 : i32
    %c0_i32_1 = arith.constant 0 : i32
    return %c0_i32, %c0_i32_0 : i32, i32
  }
  func.func @transform_9(%arg0: i32) -> (i32, i32) {
    %c0_i32 = arith.constant 0 : i32
    %c0_i32_0 = arith.constant 0 : i32
    %c0_i32_1 = arith.constant 0 : i32
    return %c0_i32, %c0_i32_0 : i32, i32
  }
  func.func @transform_10(%arg0: i32) -> (i32, i32) {
    %c0_i32 = arith.constant 0 : i32
    %c0_i32_0 = arith.constant 0 : i32
    %c0_i32_1 = arith.constant 0 : i32
    return %c0_i32, %c0_i32_0 : i32, i32
  }
  func.func @transform_11(%arg0: i32) -> (i32, i32) {
    %c0_i32 = arith.constant 0 : i32
    %c0_i32_0 = arith.constant 0 : i32
    return %arg0, %c0_i32 : i32, i32
  }
}

</mosaic_0001>

<bundles_post_ra>
// kernel: tpu_custom_call.1
= control target key start
LH: loop header
LB: loop body
LE: loop exit
PB: predicated region body
PF: predicated region fallthrough
CT: control target
= control target key end

     0   :  { %vm309_vm0 = vcmask 1043456   ;;  %vm145_vm1 = vsmask.f32 7424  ;;  %vm266_vm2 = vcmask 195584   ;;  %vm647_vm3 = vcmask 1046528   ;;  %s7552_s0 = inlined_call_operand.vmem [shape: bf16[1,224,24], index: 0, kind: input, shape index: {}]   ;;  %s7553_s1 = inlined_call_operand.vmem [shape: bf16[6,24,32], index: 1, kind: input, shape index: {}]   ;;  %s7554_s2 = inlined_call_operand.vmem [shape: f32[1,32], index: 2, kind: input, shape index: {}]   ;;  %s7555_s3 = inlined_call_operand.vmem [shape: f32[208,1], index: 3, kind: input, shape index: {}]   ;;  %s7556_s4 = inlined_call_operand.vmem [shape: bf16[6,32,32], index: 4, kind: input, shape index: {}]   ;;  %s7557_s5 = inlined_call_operand.vmem [shape: f32[1,32], index: 5, kind: input, shape index: {}]   ;;  %s7558_s6 = inlined_call_operand.vmem [shape: bf16[4,32,32], index: 6, kind: input, shape index: {}]   ;;  %s7559_s7 = inlined_call_operand.vmem [shape: f32[1,32], index: 7, kind: input, shape index: {}]   ;;  %s7560_s8 = inlined_call_operand.vmem [shape: f32[8,176], index: 8, kind: input, shape index: {}]   ;;  %s7561_s9 = inlined_call_operand.vmem [shape: bf16[32,128], index: 9, kind: input, shape index: {}]   ;;  %s7562_s10 = inlined_call_operand.vmem [shape: f32[1,128], index: 10, kind: input, shape index: {}]   ;;  %s7563_s11 = inlined_call_operand.hbm [shape: f32[8,128], index: 11, kind: output, shape index: {}]  }
   0x1   :  { %v5923_v0 = vld [vmem:[%s7553_s1 + $0xc] sm:$0xff]   ;;  %v5925_v2 = vld [vmem:[%s7553_s1 + $0x14] ss:$0 sps:$4 sm:$0xff]   ;;  %v5926_v3 = vld [vmem:[%s7553_s1 + $0x38] ss:$0 sps:$4 sm:$0xff]  }
   0x2   :  { %v5924_v1 = vld [vmem:[%s7553_s1 + $0x30] sm:$0xff]   ;;  %4720 = vmatprep.subr.bf16.mxu0 %v5923_v0  ;;  %v311_v4 = vsel %vm309_vm0, %v5925_v2, 0  ;;  %v6082_v5 = vld [vmem:[%s7552_s0] sm:$0xff]   ;;  %v918_v6 = vsel %vm309_vm0, %v5926_v3, 0  ;;  %v6089_v7 = vld [vmem:[%s7552_s0 + $0x8] sm:$0xff]  }
   0x3   :  { %4816 = vmatprep.subr.bf16.mxu1 %v5924_v1  ;;  %4721 = vmatpush3.bf16.msra.mxu0 %v5923_v0  ;;  %v147_v8 = vshrl.u32 %v6082_v5, 16  ;;  %v149_v9 = vshll.u32 %v6082_v5, 16  ;;  %v6096_v10 = vld [vmem:[%s7552_s0 + $0x10] sm:$0xff]   ;;  %v6101_v11 = vld [vmem:[%s7552_s0 + $0x18] sm:$0xff]   ;;  %v154_v12 = vshll.u32 %v6089_v7, 16  ;;  %v158_v13 = vshrl.u32 %v6089_v7, 16 }
   0x4   :  { %4817 = vmatpush3.bf16.msra.mxu1 %v5924_v1  ;;  %5910 = vmatprep.subr.msk.bf16.mxu0 %vm309_vm0, %v5925_v2  ;;  %v162_v15 = vshll.u32 %v6096_v10, 16  ;;  %v166_v16 = vshrl.u32 %v6096_v10, 16  ;;  %v170_v17 = vshll.u32 %v6101_v11, 16  ;;  %v6111_v19 = vld [vmem:[%s7552_s0 + $0x20] sm:$0xff]   ;;  %v6116_v20 = vld [vmem:[%s7552_s0 + $0x28] sm:$0xff]   ;;  %v174_v25 = vshrl.u32 %v6101_v11, 16 }
   0x5   :  { %5913 = vmatprep.subr.msk.bf16.mxu1 %vm309_vm0, %v5926_v3  ;;  %v151_v14 = vrot.slane %v149_v9, 1  ;;  %v156_v18 = vrot.slane %v154_v12, 1  ;;  %v178_v26 = vshll.u32 %v6111_v19, 16  ;;  %v182_v27 = vshrl.u32 %v6111_v19, 16  ;;  %v5934_v31 = vld [vmem:[%s7553_s1] sm:$0xff]   ;;  %v6132_v34 = vld [vmem:[%s7552_s0 + $0x30] sm:$0xff]  }
   0x6   :  { %v164_v22 = vrot.slane %v162_v15, 1  ;;  %v172_v23 = vrot.slane %v170_v17, 1  ;;  %v186_v30 = vshll.u32 %v6116_v20, 16  ;;  %v5935_v35 = vld [vmem:[%s7553_s1 + $0x24] sm:$0xff]   ;;  %v6145_v40 = vld [vmem:[%s7552_s0 + $0x38] sm:$0xff]   ;;  %v190_v41 = vshrl.u32 %v6116_v20, 16 }
   0x7   :  { %4723 = vmatpush3.bf16.msra.mxu0 %v311_v4  ;;  %v152_v21 = vor.u32 %v151_v14, %v147_v8  ;;  %v160_v24 = vor.u32 %v158_v13, %v156_v18  ;;  %v180_v33 = vrot.slane %v178_v26, 1  ;;  %v194_v42 = vshll.u32 %v6132_v34, 16  ;;  %v6153_v44 = vld [vmem:[%s7552_s0 + $0x40] sm:$0xff]   ;;  %v6163_v50 = vld [vmem:[%s7552_s0 + $0x48] sm:$0xff]   ;;  %v6171_v52 = vld [vmem:[%s7552_s0 + $0x50] sm:$0xff]  }
   0x8   :  { %4819 = vmatpush3.bf16.msra.mxu1 %v918_v6  ;;  %v168_v29 = vor.u32 %v166_v16, %v164_v22  ;;  %v176_v37 = vor.u32 %v174_v25, %v172_v23  ;;  %v188_v39 = vrot.slane %v186_v30, 1  ;;  %4752 = vmatprep.subr.bf16.mxu0 %v5934_v31  ;;  %v198_v46 = vshrl.u32 %v6132_v34, 16  ;;  %v6176_v53 = vld [vmem:[%s7553_s1 + $0x18] sm:$0xff]   ;;  %v5943_v56 = vld [vmem:[%s7553_s1 + $0x8] ss:$0 sps:$4 sm:$0xff]   ;;  %v6208_v8 = vld [vmem:[%s7552_s0 + $0x60] sm:$0xff]  }
   0x9   :  { %v157_v28 = vsel %vm145_vm1, %v152_v21, %v156_v18  ;;  %v165_v32 = vsel %vm145_vm1, %v160_v24, %v164_v22  ;;  %v184_v38 = vor.u32 %v182_v27, %v180_v33  ;;  %4848 = vmatprep.subr.bf16.mxu1 %v5935_v35  ;;  %v202_v47 = vshll.u32 %v6145_v40, 16  ;;  %v6184_v57 = vld [vmem:[%s7553_s1 + $0x3c] sm:$0xff]   ;;  %v5944_v58 = vld [vmem:[%s7553_s1 + $0x2c] ss:$0 sps:$4 sm:$0xff]   ;;  %v6219_v13 = vld [vmem:[%s7552_s0 + $0x68] sm:$0xf] }
   0xa   :  { %4724 = vmatprep.mubr.msk.bf16.mxu0 %vm266_vm2, %v157_v28  ;;  %4820 = vmatprep.mubr.msk.bf16.mxu1 %vm266_vm2, %v157_v28  ;;  %v173_v36 = vsel %vm145_vm1, %v168_v29, %v172_v23  ;;  %v181_v43 = vsel %vm145_vm1, %v176_v37, %v180_v33  ;;  %v192_v48 = vor.u32 %v190_v41, %v188_v39  ;;  %v196_v49 = vrot.slane %v194_v42, 1  ;;  %v6203_v6 = vld [vmem:[%s7552_s0 + $0x58] sm:$0xff]   ;;  %v67_v15 = vld [vmem:[%s7552_s0 + $0x6c] sm:$0xf]  ;;  %v1628_v41 = vld [vmem:[%s7555_s3 + $0x10] sm:$0xff] }
   0xb   :  { %4725 = vmatmul.mubr.msk.bf16.vlgmr.msra.gmra.mrb[0].mxu0 %vm266_vm2, %v165_v32  ;;  %4821 = vmatmul.mubr.msk.bf16.vlgmr.msra.gmra.mrb[0].mxu1 %vm266_vm2, %v165_v32  ;;  %v189_v45 = vsel %vm145_vm1, %v184_v38, %v188_v39  ;;  %v210_v51 = vshll.u32 %v6153_v44, 16  ;;  %v204_v55 = vrot.slane %v202_v47, 1  ;;  %v206_v60 = vshrl.u32 %v6145_v40, 16  ;;  %v1626_v42 = vld [vmem:[%s7555_s3] sm:$0xff] }
   0xc   :  { %4728 = vmatprep.mubr.msk.bf16.mxu0 %vm266_vm2, %v173_v36  ;;  %4824 = vmatprep.mubr.msk.bf16.mxu1 %vm266_vm2, %v173_v36  ;;  %v200_v54 = vor.u32 %v198_v46, %v196_v49  ;;  %v197_v59 = vsel %vm145_vm1, %v192_v48, %v196_v49  ;;  %v214_v61 = vshrl.u32 %v6153_v44, 16  ;;  %v497_v62 = vsel %vm309_vm0, %v5943_v56, 0  ;;  %v1629_v48 = vld [vmem:[%s7555_s3 + $0x18] sm:$0xff]  ;;  %v1627_v49 = vld [vmem:[%s7555_s3 + $0x8] sm:$0xff] }
   0xd   :  { %4753 = vmatpush3.bf16.msra.mxu0 %v5934_v31  ;;  %4849 = vmatpush3.bf16.msra.mxu1 %v5935_v35  ;;  %v1074_v63 = vsel %vm309_vm0, %v5944_v58, 0  ;;  %v218_v1 = vshll.u32 %v6163_v50, 16  ;;  %v648_v2 = vrot.slane %v6082_v5, 1  ;;  %v212_v3 = vrot.slane %v210_v51, 1 }
   0xe   :  { %5911 = vmatprep.subr.msk.bf16.mxu0 %vm309_vm0, %v5943_v56  ;;  %5914 = vmatprep.subr.msk.bf16.mxu1 %vm309_vm0, %v5944_v58  ;;  %v205_v0 = vsel %vm145_vm1, %v200_v54, %v204_v55  ;;  %v226_v4 = vshll.u32 %v6171_v52, 16  ;;  %v649_v9 = vrot.slane %v6089_v7, 1  ;;  %v651_v12 = vrot.slane %v6096_v10, 1  ;;  %v1631_v56 = vld [vmem:[%s7555_s3 + $0x28] sm:$0xff]  ;;  %v1630_v58 = vld [vmem:[%s7555_s3 + $0x20] sm:$0xff] }
   0xf   :  { %v208_v14 = vor.u32 %v206_v60, %v204_v55  ;;  %v216_v18 = vor.u32 %v214_v61, %v212_v3  ;;  %v220_v21 = vrot.slane %v218_v1, 1  ;;  %v222_v22 = vshrl.u32 %v6163_v50, 16 }
  0x10   :  { %v6227_v16 = vsel %vm647_vm3, %v648_v2, %v649_v9  ;;  %v6232_v17 = vsel %vm647_vm3, %v649_v9, %v651_v12  ;;  %v228_v23 = vrot.slane %v226_v4, 1  ;;  %v230_v24 = vshrl.u32 %v6171_v52, 16 }
  0x11   :  { %4755 = vmatpush3.bf16.msra.mxu0 %v497_v62  ;;  %4851 = vmatpush3.bf16.msra.mxu1 %v1074_v63  ;;  %v234_v25 = vshll.u32 %v6203_v6, 16  ;;  %v238_v26 = vshrl.u32 %v6203_v6, 16  ;;  %v242_v27 = vshll.u32 %v6208_v8, 16  ;;  %v6240_v28 = vcombine.low %v6219_v13, %v67_v15 }
  0x12   :  { %4784 = vmatprep.subr.bf16.mxu0 %v6176_v53  ;;  %4880 = vmatprep.subr.bf16.mxu1 %v6184_v57  ;;  %v246_v29 = vshrl.u32 %v6208_v8, 16  ;;  %v213_v30 = vsel %vm145_vm1, %v208_v14, %v212_v3  ;;  %v221_v31 = vsel %vm145_vm1, %v216_v18, %v220_v21  ;;  %v224_v35 = vor.u32 %v222_v22, %v220_v21 }
  0x13   :  { %4729 = vmatmul.mubr.msk.bf16.gmra.mrb[4].mxu0 %vm266_vm2, %v181_v43  ;;  %4825 = vmatmul.mubr.msk.bf16.gmra.mrb[4].mxu1 %vm266_vm2, %v181_v43  ;;  %v236_v32 = vrot.slane %v234_v25, 1  ;;  %v250_v33 = vshll.u32 %v6240_v28, 16  ;;  %v232_v36 = vor.u32 %v230_v24, %v228_v23  ;;  %v244_v39 = vrot.slane %v242_v27, 1 }
  0x14   :  { %4732 = vmatprep.mubr.msk.bf16.mxu0 %vm266_vm2, %v189_v45  ;;  %4828 = vmatprep.mubr.msk.bf16.mxu1 %vm266_vm2, %v189_v45  ;;  %v229_v37 = vsel %vm145_vm1, %v224_v35, %v228_v23  ;;  %v6000_v47 = vmov 0   ;;  %v254_v55 = vshrl.u32 %v6240_v28, 16 }
  0x15   :  { %v237_v38 = vsel %vm145_vm1, %v232_v36, %v236_v32  ;;  %v240_v43 = vor.u32 %v238_v26, %v236_v32  ;;  %v248_v45 = vor.u32 %v246_v29, %v244_v39  ;;  %v252_v46 = vrot.slane %v250_v33, 1  ;;  %5922 = vset.pattern.permute.xlu1 %v6000_v47  ;;  %5921 = vset.pattern.permute.xlu0 %v6000_v47 }
  0x16   :  { %1664 = vperm.xlu1 %5922, %v1628_v41   ;;  %1654 = vperm.xlu0 %5921, %v1626_v42  }
  0x17   :  { %v245_v51 = vsel %vm145_vm1, %v240_v43, %v244_v39  ;;  %v253_v54 = vsel %vm145_vm1, %v248_v45, %v252_v46 }
  0x1a   :  { %1669 = vperm.xlu1 %5922, %v1629_v48   ;;  %1659 = vperm.xlu0 %5921, %v1627_v49  }
  0x1b   :  { %4733 = vmatmul.mubr.msk.bf16.gmra.mrb[8].mxu0 %vm266_vm2, %v197_v59  ;;  %4829 = vmatmul.mubr.msk.bf16.gmra.mrb[8].mxu1 %vm266_vm2, %v197_v59 }
  0x1c   :  { %4736 = vmatprep.mubr.msk.bf16.mxu0 %vm266_vm2, %v205_v0  ;;  %4832 = vmatprep.mubr.msk.bf16.mxu1 %vm266_vm2, %v205_v0 }
  0x23   :  { %4737 = vmatmul.mubr.msk.bf16.gmra.mrb[12].mxu0 %vm266_vm2, %v213_v30  ;;  %4833 = vmatmul.mubr.msk.bf16.gmra.mrb[12].mxu1 %vm266_vm2, %v213_v30 }
  0x24   :  { %4740 = vmatprep.mubr.msk.bf16.mxu0 %vm266_vm2, %v221_v31  ;;  %4836 = vmatprep.mubr.msk.bf16.mxu1 %vm266_vm2, %v221_v31 }
  0x2b   :  { %4741 = vmatmul.mubr.msk.bf16.gmra.mrb[16].mxu0 %vm266_vm2, %v229_v37  ;;  %4837 = vmatmul.mubr.msk.bf16.gmra.mrb[16].mxu1 %vm266_vm2, %v229_v37 }
  0x2c   :  { %4744 = vmatprep.mubr.msk.bf16.mxu0 %vm266_vm2, %v237_v38  ;;  %4840 = vmatprep.mubr.msk.bf16.mxu1 %vm266_vm2, %v237_v38 }
  0x33   :  { %4745 = vmatmul.mubr.msk.bf16.gmra.mrb[20].mxu0 %vm266_vm2, %v245_v51  ;;  %4841 = vmatmul.mubr.msk.bf16.gmra.mrb[20].mxu1 %vm266_vm2, %v245_v51 }
  0x34   :  { %4748 = vmatprep.mubr.msk.bf16.mxu0 %vm266_vm2, %v253_v54  ;;  %4844 = vmatprep.mubr.msk.bf16.mxu1 %vm266_vm2, %v253_v54 }
  0x35   :  { %16 = vsyncpa [#allocation3], 0  ;;  %1679 = vperm.xlu1 %5922, %v1631_v56   ;;  %1674 = vperm.xlu0 %5921, %v1630_v58   ;;  %v256_v59 = vor.u32 %v254_v55, %v252_v46  ;;  %v1633_v60 = vld [vmem:[%s7555_s3 + $0x38] sm:$0xff]  ;;  %v1632_v61 = vld [vmem:[%s7555_s3 + $0x30] sm:$0xff]  ;;  %v4204_v30 = vcombine.low %v6219_v13, %v6219_v13  ;;  %v653_v31 = vrot.slane %v6101_v11, 1  ;;  %v663_v35 = vrot.slane %v6153_v44, 1 }
  0x36   :  { %v1635_v62 = vld [vmem:[%s7555_s3 + $0x48] sm:$0xff]  ;;  %v1634_v63 = vld [vmem:[%s7555_s3 + $0x40] sm:$0xff]  ;;  %v1637_v0 = vld [vmem:[%s7555_s3 + $0x58] sm:$0xff]  ;;  %v665_v36 = vrot.slane %v6163_v50, 1  ;;  %v667_v37 = vrot.slane %v6171_v52, 1  ;;  %v669_v38 = vrot.slane %v6203_v6, 1 }
  0x37   :  { %v1636_v1 = vld [vmem:[%s7555_s3 + $0x50] sm:$0xff]  ;;  %v5948_v2 = vld [vmem:[%s7553_s1 + $0x20] ss:$0 sps:$4 sm:$0xff]   ;;  %v5949_v3 = vld [vmem:[%s7553_s1 + $0x44] ss:$0 sps:$4 sm:$0xff]   ;;  %v654_v32 = vsel %vm647_vm3, %v651_v12, %v653_v31  ;;  %v671_v39 = vrot.slane %v6208_v8, 1 }
  0x38   :  { %v1638_v4 = vld [vmem:[%s7555_s3 + $0x60] sm:$0xff]  ;;  %v1234_v9 = vsel %vm309_vm0, %v5949_v3, 0  ;;  %v1641_v14 = vld [vmem:[%s7555_s3 + $0x78] sm:$0xff]  ;;  %v1643_v15 = vld [vmem:[%s7555_s3 + $0x88] sm:$0xff]  ;;  %v673_v41 = vrot.slane %v6240_v28, 1  ;;  %vm6002_vm4 = vmmov 0  }
  0x39   :  { %1689 = vperm.xlu1 %5922, %v1633_v60   ;;  %1684 = vperm.xlu0 %5921, %v1632_v61   ;;  %v1642_v18 = vld [vmem:[%s7555_s3 + $0x80] sm:$0xff]  ;;  %v1645_v21 = vld [vmem:[%s7555_s3 + $0x98] sm:$0xff]  ;;  %v1644_v22 = vld [vmem:[%s7555_s3 + $0x90] sm:$0xff]  ;;  %vm1880_vm5 = vcmask 261120   ;;  %vm2248_vm6 = vcmask 1045504   ;;  %vm3783_vm7 = vcmask 1041408  }
  0x3a   :  { %v1647_v23 = vld [vmem:[%s7555_s3 + $0xa8] sm:$0xff]  ;;  %v1646_v24 = vld [vmem:[%s7555_s3 + $0xa0] sm:$0xff]  ;;  %v1649_v25 = vld [vmem:[%s7555_s3 + $0xb8] sm:$0xff]  ;;  %vm4004_vm8 = vcmask 392192  }
  0x3b   :  { %4749 = vmatmul.mubr.msk.bf16.gmra.mrb[24].mxu0 %vm266_vm2, %v256_v59  ;;  %4845 = vmatmul.mubr.msk.bf16.gmra.mrb[24].mxu1 %vm266_vm2, %v256_v59  ;;  %v1648_v26 = vld [vmem:[%s7555_s3 + $0xb0] sm:$0xff]  ;;  %v1651_v27 = vld [vmem:[%s7555_s3 + $0xc8] sm:$0xff]  ;;  %v1650_v29 = vld [vmem:[%s7555_s3 + $0xc0] sm:$0xff] }
  0x3c   :  { %4756 = vmatprep.mubr.msk.bf16.mxu0 %vm266_vm2, %v6082_v5  ;;  %4852 = vmatprep.mubr.msk.bf16.mxu1 %vm266_vm2, %v6082_v5  ;;  %v1639_v5 = vld [vmem:[%s7555_s3 + $0x68] sm:$0xff]  ;;  %v5950_v13 = vld [vmem:[%s7556_s4 + $0x10] sm:$0xff]   ;;  %v5953_v42 = vld [vmem:[%s7556_s4 + $0x18] sm:$0xff]  }
  0x3d   :  { %1699 = vperm.xlu1 %5922, %v1635_v62   ;;  %1694 = vperm.xlu0 %5921, %v1634_v63   ;;  %v6483_v28 = vld [vmem:[%s7556_s4 + $0x8] sm:$0xff]  }
  0x41   :  { %1709 = vperm.xlu1 %5922, %v1637_v0   ;;  %1704 = vperm.xlu0 %5921, %v1636_v1  }
  0x43   :  { %4757 = vmatmul.mubr.msk.bf16.vlgmr.msra.gmra.mrb[0].mxu0 %vm266_vm2, %v6089_v7  ;;  %4853 = vmatmul.mubr.msk.bf16.vlgmr.msra.gmra.mrb[0].mxu1 %vm266_vm2, %v6089_v7  ;;  %v727_v7 = vsel %vm309_vm0, %v5948_v2, 0 }
  0x44   :  { %4760 = vmatprep.mubr.msk.bf16.mxu0 %vm266_vm2, %v6096_v10  ;;  %4856 = vmatprep.mubr.msk.bf16.mxu1 %vm266_vm2, %v6096_v10  ;;  %v657_v10 = vrot.slane %v6116_v20, 1 }
  0x45   :  { %4785 = vmatpush3.bf16.msra.mxu0 %v6176_v53  ;;  %4881 = vmatpush3.bf16.msra.mxu1 %v6184_v57  ;;  %v1640_v53 = vld [vmem:[%s7555_s3 + $0x70] sm:$0xff]  ;;  %v6001_v57 = vmov 0.0  }
  0x46   :  { %5912 = vmatprep.subr.msk.bf16.mxu0 %vm309_vm0, %v5948_v2  ;;  %5915 = vmatprep.subr.msk.bf16.mxu1 %vm309_vm0, %v5949_v3 }
  0x47   :  { %1719 = vperm.xlu1 %5922, %v1639_v5   ;;  %1714 = vperm.xlu0 %5921, %v1638_v4  }
  0x49   :  { %4787 = vmatpush3.bf16.msra.mxu0 %v727_v7  ;;  %4883 = vmatpush3.bf16.msra.mxu1 %v1234_v9 }
  0x4a   :  { %4912 = vmatprep.subr.bf16.mxu1 %v6001_v57  ;;  %4968 = vmatprep.subr.bf16.mxu0 %v6001_v57 }
  0x4b   :  { %4761 = vmatmul.mubr.msk.bf16.gmra.mrb[4].mxu0 %vm266_vm2, %v6101_v11  ;;  %4857 = vmatmul.mubr.msk.bf16.gmra.mrb[4].mxu1 %vm266_vm2, %v6101_v11  ;;  %v655_v11 = vrot.slane %v6111_v19, 1 }
  0x4c   :  { %4764 = vmatprep.mubr.msk.bf16.mxu0 %vm266_vm2, %v6111_v19  ;;  %4860 = vmatprep.mubr.msk.bf16.mxu1 %vm266_vm2, %v6111_v19  ;;  %v661_v19 = vrot.slane %v6145_v40, 1 }
  0x4d   :  { %1729 = vperm.xlu1 %5922, %v1641_v14   ;;  %1724 = vperm.xlu0 %5921, %v1640_v53   ;;  %v656_v12 = vsel %vm647_vm3, %v653_v31, %v655_v11 }
  0x51   :  { %1739 = vperm.xlu1 %5922, %v1643_v15   ;;  %1734 = vperm.xlu0 %5921, %v1642_v18  }
  0x53   :  { %4765 = vmatmul.mubr.msk.bf16.gmra.mrb[8].mxu0 %vm266_vm2, %v6116_v20  ;;  %4861 = vmatmul.mubr.msk.bf16.gmra.mrb[8].mxu1 %vm266_vm2, %v6116_v20 }
  0x54   :  { %4768 = vmatprep.mubr.msk.bf16.mxu0 %vm266_vm2, %v6132_v34  ;;  %4864 = vmatprep.mubr.msk.bf16.mxu1 %vm266_vm2, %v6132_v34 }
  0x55   :  { %1749 = vperm.xlu1 %5922, %v1645_v21   ;;  %1744 = vperm.xlu0 %5921, %v1644_v22  }
  0x59   :  { %1759 = vperm.xlu1 %5922, %v1647_v23   ;;  %1754 = vperm.xlu0 %5921, %v1646_v24   ;;  %v6519_v23 = vld [vmem:[%s7554_s2] ss:$0 sm:$0xff] }
  0x5b   :  { %4769 = vmatmul.mubr.msk.bf16.gmra.mrb[12].mxu0 %vm266_vm2, %v6145_v40  ;;  %4865 = vmatmul.mubr.msk.bf16.gmra.mrb[12].mxu1 %vm266_vm2, %v6145_v40  ;;  %v666_v40 = vsel %vm647_vm3, %v663_v35, %v665_v36 }
  0x5c   :  { %4772 = vmatprep.mubr.msk.bf16.mxu0 %vm266_vm2, %v6153_v44  ;;  %4868 = vmatprep.mubr.msk.bf16.mxu1 %vm266_vm2, %v6153_v44  ;;  %v668_v44 = vsel %vm647_vm3, %v665_v36, %v667_v37 }
  0x5d   :  { %1769 = vperm.xlu1 %5922, %v1649_v25   ;;  %1764 = vperm.xlu0 %5921, %v1648_v26  }
  0x61   :  { %1779 = vperm.xlu1 %5922, %v1651_v27   ;;  %1774 = vperm.xlu0 %5921, %v1650_v29  }
  0x63   :  { %4773 = vmatmul.mubr.msk.bf16.gmra.mrb[16].mxu0 %vm266_vm2, %v6163_v50  ;;  %4869 = vmatmul.mubr.msk.bf16.gmra.mrb[16].mxu1 %vm266_vm2, %v6163_v50  ;;  %v670_v50 = vsel %vm647_vm3, %v667_v37, %v669_v38 }
  0x64   :  { %4776 = vmatprep.mubr.msk.bf16.mxu0 %vm266_vm2, %v6171_v52  ;;  %4872 = vmatprep.mubr.msk.bf16.mxu1 %vm266_vm2, %v6171_v52  ;;  %v672_v52 = vsel %vm647_vm3, %v669_v38, %v671_v39 }
  0x6b   :  { %4777 = vmatmul.mubr.msk.bf16.gmra.mrb[20].mxu0 %vm266_vm2, %v6203_v6  ;;  %4873 = vmatmul.mubr.msk.bf16.gmra.mrb[20].mxu1 %vm266_vm2, %v6203_v6  ;;  %v674_v6 = vsel %vm647_vm3, %v671_v39, %v673_v41 }
  0x6c   :  { %4780 = vmatprep.mubr.msk.bf16.mxu0 %vm266_vm2, %v6208_v8  ;;  %4876 = vmatprep.mubr.msk.bf16.mxu1 %vm266_vm2, %v6208_v8  ;;  %v6476_v8 = vld [vmem:[%s7556_s4] sm:$0xff]  }
  0x73   :  { %4781 = vmatmul.mubr.msk.bf16.gmra.mrb[24].mxu0 %vm266_vm2, %v4204_v30  ;;  %4877 = vmatmul.mubr.msk.bf16.gmra.mrb[24].mxu1 %vm266_vm2, %v4204_v30 }
  0x74   :  { %4788 = vmatprep.mubr.msk.bf16.mxu0 %vm266_vm2, %v6227_v16  ;;  %4884 = vmatprep.mubr.msk.bf16.mxu1 %vm266_vm2, %v6227_v16  ;;  %v658_v16 = vsel %vm647_vm3, %v655_v11, %v657_v10 }
  0x7b   :  { %4789 = vmatmul.mubr.msk.bf16.vlgmr.msra.gmra.mrb[0].mxu0 %vm266_vm2, %v6232_v17  ;;  %4885 = vmatmul.mubr.msk.bf16.vlgmr.msra.gmra.mrb[0].mxu1 %vm266_vm2, %v6232_v17  ;;  %v659_v17 = vrot.slane %v6132_v34, 1  ;;  %v664_v34 = vsel %vm647_vm3, %v661_v19, %v663_v35 }
  0x7c   :  { %4792 = vmatprep.mubr.msk.bf16.mxu0 %vm266_vm2, %v654_v32  ;;  %4888 = vmatprep.mubr.msk.bf16.mxu1 %vm266_vm2, %v654_v32 }
  0x7d   :  { %4913 = vmatpush3.bf16.msra.mxu1 %v5950_v13  ;;  %v660_v20 = vsel %vm647_vm3, %v657_v10, %v659_v17  ;;  %v662_v33 = vsel %vm647_vm3, %v659_v17, %v661_v19  ;;  %4969 = vmatpush3.bf16.msra.mxu0 %v6476_v8 }
  0x7e   :  { %4914 = vmatprep.subr.bf16.mxu1 %v6001_v57  ;;  %4970 = vmatprep.subr.bf16.mxu0 %v6001_v57 }
  0x81   :  { %4971 = vmatpush3.bf16.msra.mxu0 %v6483_v28  ;;  %4915 = vmatpush3.bf16.msra.mxu1 %v5953_v42 }
  0x82   :  { %5024 = vmatprep.subr.bf16.mxu0 %v6001_v57  ;;  %5481 = vmatprep.subr.bf16.mxu1 %v6001_v57 }
  0x83   :  { %4793 = vmatmul.mubr.msk.bf16.gmra.mrb[4].mxu0 %vm266_vm2, %v656_v12  ;;  %4889 = vmatmul.mubr.msk.bf16.gmra.mrb[4].mxu1 %vm266_vm2, %v656_v12 }
  0x84   :  { %4796 = vmatprep.mubr.msk.bf16.mxu0 %vm266_vm2, %v658_v16  ;;  %4892 = vmatprep.mubr.msk.bf16.mxu1 %vm266_vm2, %v658_v16 }
  0x8b   :  { %4797 = vmatmul.mubr.msk.bf16.gmra.mrb[8].mxu0 %vm266_vm2, %v660_v20  ;;  %4893 = vmatmul.mubr.msk.bf16.gmra.mrb[8].mxu1 %vm266_vm2, %v660_v20 }
  0x8c   :  { %4800 = vmatprep.mubr.msk.bf16.mxu0 %vm266_vm2, %v662_v33  ;;  %4896 = vmatprep.mubr.msk.bf16.mxu1 %vm266_vm2, %v662_v33 }
  0x93   :  { %4801 = vmatmul.mubr.msk.bf16.gmra.mrb[12].mxu0 %vm266_vm2, %v664_v34  ;;  %4897 = vmatmul.mubr.msk.bf16.gmra.mrb[12].mxu1 %vm266_vm2, %v664_v34 }
  0x94   :  { %4804 = vmatprep.mubr.msk.bf16.mxu0 %vm266_vm2, %v666_v40  ;;  %4900 = vmatprep.mubr.msk.bf16.mxu1 %vm266_vm2, %v666_v40 }
  0x95   :  { %v6495_v43 = vpop.permute.xlu1 %1664  ;;  %v1655_v45 = vpop.permute.xlu0 %1654 }
  0x99   :  { %v6497_v46 = vpop.permute.xlu1 %1669  ;;  %v1660_v47 = vpop.permute.xlu0 %1659 }
  0x9b   :  { %4805 = vmatmul.mubr.msk.bf16.gmra.mrb[16].mxu0 %vm266_vm2, %v668_v44  ;;  %4901 = vmatmul.mubr.msk.bf16.gmra.mrb[16].mxu1 %vm266_vm2, %v668_v44 }
  0x9c   :  { %4808 = vmatprep.mubr.msk.bf16.mxu0 %vm266_vm2, %v670_v50  ;;  %4904 = vmatprep.mubr.msk.bf16.mxu1 %vm266_vm2, %v670_v50 }
  0xa3   :  { %4809 = vmatmul.mubr.msk.bf16.gmra.mrb[20].mxu0 %vm266_vm2, %v672_v52  ;;  %4905 = vmatmul.mubr.msk.bf16.gmra.mrb[20].mxu1 %vm266_vm2, %v672_v52 }
  0xa4   :  { %4812 = vmatprep.mubr.msk.bf16.mxu0 %vm266_vm2, %v674_v6  ;;  %4908 = vmatprep.mubr.msk.bf16.mxu1 %vm266_vm2, %v674_v6 }
  0xab   :  { %4813 = vmatmul.mubr.msk.bf16.gmra.mrb[24].mxu0 %vm266_vm2, %v673_v41  ;;  %4909 = vmatmul.mubr.msk.bf16.gmra.mrb[24].mxu1 %vm266_vm2, %v673_v41 }
  0xac   :  { %4972 = vmatprep.mubr.msk.bf16.mxu0 %vm6002_vm4, %v6001_v57  ;;  %4916 = vmatprep.mubr.msk.bf16.mxu1 %vm6002_vm4, %v6001_v57 }
  0xb4   :  { %v6499_v48 = vpop.permute.xlu1 %1679  ;;  %v6501_v49 = vpop.permute.xlu0 %1674 }
  0xb8   :  { %v6503_v51 = vpop.permute.xlu1 %1689  ;;  %v6505_v54 = vpop.permute.xlu0 %1684 }
  0xbc   :  { %v6507_v55 = vpop.permute.xlu1 %1699  ;;  %v6509_v56 = vpop.permute.xlu0 %1694 }
  0xc0   :  { %v6511_v15 = vpop.permute.xlu1 %1709  ;;  %v6513_v18 = vpop.permute.xlu0 %1704 }
  0xc6   :  { %v6530_v41 = vpop.permute.xlu1 %1719  ;;  %v6532_v52 = vpop.permute.xlu0 %1714 }
 0x14e   :  { %v4790_v58 = vpop.f32.mrb[0].mxu0  ;;  %v4886_v59 = vpop.f32.mrb[0].mxu1 }
 0x14f   :  { %v1409_v60 = vmax.f32 %v4790_v58, %v4886_v59  ;;  %v763_v61 = vpop.f32.mrb[1].mxu0  ;;  %v1270_v62 = vpop.f32.mrb[1].mxu1 }
 0x150   :  { %v1407_v63 = vmax.f32 %v763_v61, %v1270_v62  ;;  %v4791_v0 = vpop.f32.mrb[2].mxu0  ;;  %v4887_v1 = vpop.f32.mrb[2].mxu1 }
 0x151   :  { %v1410_v2 = vmax.f32 %v4791_v0, %v4887_v1  ;;  %v766_v3 = vpop.f32.mrb[3].mxu0  ;;  %v1273_v5 = vpop.f32.mrb[3].mxu1  ;;  %v1465_v7 = vrot.slane %v1409_v60, 1 }
 0x152   :  { %v1408_v4 = vmax.f32 %v766_v3, %v1273_v5  ;;  %v1462_v14 = vrot.slane %v1407_v63, 1  ;;  %v5954_v3 = vld [vmem:[%s7556_s4 + $0x20] sm:$0xff]  }
 0x153   :  { %v1467_v9 = vrot.slane %v1410_v2, 1 }
 0x154   :  { %v1463_v53 = vrot.slane %v1408_v4, 1 }
 0x155   :  { %v1468_v21 = vsel %vm647_vm3, %v1465_v7, %v1467_v9 }
 0x156   :  { %v1543_v22 = vmax.f32 %v1409_v60, %v1468_v21  ;;  %v1464_v24 = vsel %vm647_vm3, %v1462_v14, %v1463_v53  ;;  %v1466_v25 = vsel %vm647_vm3, %v1463_v53, %v1465_v7  ;;  %v4794_v26 = vpop.f32.mrb[4].mxu0  ;;  %v4890_v27 = vpop.f32.mrb[4].mxu1 }
 0x157   :  { %v1541_v29 = vmax.f32 %v1407_v63, %v1464_v24  ;;  %v1542_v30 = vmax.f32 %v1408_v4, %v1466_v25  ;;  %v1413_v31 = vmax.f32 %v4794_v26, %v4890_v27  ;;  %v779_v32 = vpop.f32.mrb[5].mxu0  ;;  %v1286_v13 = vpop.f32.mrb[5].mxu1 }
 0x158   :  { %v1411_v11 = vmax.f32 %v779_v32, %v1286_v13  ;;  %v4795_v10 = vpop.f32.mrb[6].mxu0  ;;  %v4891_v12 = vpop.f32.mrb[6].mxu1  ;;  %v1576_v35 = vadd.f32 %v6519_v23, %v1543_v22 }
 0x159   :  { %v1574_v16 = vadd.f32 %v6519_v23, %v1541_v29  ;;  %v1575_v17 = vadd.f32 %v6519_v23, %v1542_v30  ;;  %v6525_v19 = vmax.f32 %v4795_v10, %v4891_v12  ;;  %v782_v20 = vpop.f32.mrb[7].mxu0  ;;  %v1289_v33 = vpop.f32.mrb[7].mxu1  ;;  %v1473_v38 = vrot.slane %v1413_v31, 1  ;;  %v5955_v10 = vld [vmem:[%s7556_s4 + $0x28] sm:$0xff]  }
 0x15a   :  { %v1469_v36 = vrot.slane %v1411_v11, 1  ;;  %v1412_v34 = vmax.f32 %v782_v20, %v1289_v33  ;;  %v1602_v60 = vmax.f32 %v1576_v35, 0.0 }
 0x15b   :  { %v1600_v40 = vmax.f32 %v1574_v16, 0.0  ;;  %v1601_v37 = vmax.f32 %v1575_v17, 0.0  ;;  %v1475_v44 = vrot.slane %v6525_v19, 1 }
 0x15c   :  { %v1470_v50 = vsel %vm647_vm3, %v1467_v9, %v1469_v36  ;;  %v1471_v39 = vrot.slane %v1412_v34, 1 }
 0x15d   :  { %v1782_v6 = vmul.f32 %v1655_v45, %v1600_v40  ;;  %v1783_v42 = vmul.f32 %v1660_v47, %v1601_v37  ;;  %v1544_v58 = vmax.f32 %v1410_v2, %v1470_v50  ;;  %v1476_v59 = vsel %vm647_vm3, %v1473_v38, %v1475_v44  ;;  %v6563_v40 = vpop.permute.xlu0 %1724 }
 0x15e   :  { %v1547_v61 = vmax.f32 %v1413_v31, %v1476_v59  ;;  %v1472_v62 = vsel %vm647_vm3, %v1469_v36, %v1471_v39  ;;  %v1474_v63 = vsel %vm647_vm3, %v1471_v39, %v1473_v38  ;;  %v4798_v0 = vpop.f32.mrb[8].mxu0  ;;  %v4894_v1 = vpop.f32.mrb[8].mxu1 }
 0x15f   :  { %v6540_v5 = vpack.c.bf16 %v1783_v42, %v1782_v6  ;;  %v1577_v45 = vadd.f32 %v6519_v23, %v1544_v58  ;;  %v1545_v47 = vmax.f32 %v1411_v11, %v1472_v62  ;;  %v1546_v2 = vmax.f32 %v1412_v34, %v1474_v63  ;;  %v795_v4 = vpop.f32.mrb[9].mxu0  ;;  %v1302_v7 = vpop.f32.mrb[9].mxu1 }
 0x160   :  { %v1580_v9 = vadd.f32 %v6519_v23, %v1547_v61  ;;  %v1417_v14 = vmax.f32 %v4798_v0, %v4894_v1  ;;  %v1415_v53 = vmax.f32 %v795_v4, %v1302_v7  ;;  %v4799_v21 = vpop.f32.mrb[10].mxu0  ;;  %v4895_v22 = vpop.f32.mrb[10].mxu1  ;;  %v1784_v11 = vmul.f32 %v6495_v43, %v1602_v60 }
 0x161   :  { %v1603_v24 = vmax.f32 %v1577_v45, 0.0  ;;  %v1578_v25 = vadd.f32 %v6519_v23, %v1545_v47  ;;  %v1579_v26 = vadd.f32 %v6519_v23, %v1546_v2  ;;  %v6546_v27 = vmax.f32 %v4799_v21, %v4895_v22  ;;  %v798_v29 = vpop.f32.mrb[11].mxu0  ;;  %v1305_v30 = vpop.f32.mrb[11].mxu1  ;;  %4973 = vmatmul.mubr.msk.bf16.vlgmr.msra.gmra.mrb[28].mxu0 %vm1880_vm5, %v6540_v5 }
 0x162   :  { %v1481_v31 = vrot.slane %v1417_v14, 1  ;;  %v1477_v32 = vrot.slane %v1415_v53, 1  ;;  %v1416_v13 = vmax.f32 %v798_v29, %v1305_v30  ;;  %4976 = vmatprep.mubr.msk.bf16.mxu0 %vm6002_vm4, %v6001_v57  ;;  %5025 = vmatpush3.bf16.msra.mxu0 %v5954_v3  ;;  %v1606_v33 = vmax.f32 %v1580_v9, 0.0  ;;  %v6561_v43 = vpop.permute.xlu1 %1729 }
 0x163   :  { %v1604_v12 = vmax.f32 %v1578_v25, 0.0  ;;  %v1605_v16 = vmax.f32 %v1579_v26, 0.0  ;;  %v1483_v17 = vrot.slane %v6546_v27, 1  ;;  %v1785_v20 = vmul.f32 %v6497_v46, %v1603_v24  ;;  %5026 = vmatprep.subr.bf16.mxu0 %v6001_v57 }
 0x164   :  { %v1478_v35 = vsel %vm647_vm3, %v1475_v44, %v1477_v32  ;;  %v1479_v36 = vrot.slane %v1416_v13, 1  ;;  %v1843_v34 = vrot.slane %v6540_v5, 1 }
 0x165   :  { %v1787_v37 = vmul.f32 %v6499_v48, %v1605_v16  ;;  %v1548_v38 = vmax.f32 %v6525_v19, %v1478_v35  ;;  %v1484_v50 = vsel %vm647_vm3, %v1481_v31, %v1483_v17  ;;  %v6568_v39 = vpack.c.bf16 %v1785_v20, %v1784_v11 }
 0x166   :  { %v1551_v46 = vmax.f32 %v1417_v14, %v1484_v50  ;;  %v1480_v6 = vsel %vm647_vm3, %v1477_v32, %v1479_v36  ;;  %v1482_v44 = vsel %vm647_vm3, %v1479_v36, %v1481_v31  ;;  %v4802_v42 = vpop.f32.mrb[12].mxu0  ;;  %v4898_v58 = vpop.f32.mrb[12].mxu1  ;;  %v1786_v59 = vmul.f32 %v6501_v49, %v1604_v12  ;;  %5027 = vmatpush3.bf16.msra.mxu0 %v5955_v10 }
 0x167   :  { %v1581_v60 = vadd.f32 %v6519_v23, %v1548_v38  ;;  %v1549_v61 = vmax.f32 %v1415_v53, %v1480_v6  ;;  %v1550_v48 = vmax.f32 %v1416_v13, %v1482_v44  ;;  %v1421_v62 = vmax.f32 %v4802_v42, %v4898_v58  ;;  %v811_v19 = vpop.f32.mrb[13].mxu0  ;;  %v1318_v63 = vpop.f32.mrb[13].mxu1  ;;  %5248 = vmatprep.subr.bf16.mxu0 %v6001_v57 }
 0x168   :  { %v1584_v0 = vadd.f32 %v6519_v23, %v1551_v46  ;;  %v1419_v1 = vmax.f32 %v811_v19, %v1318_v63  ;;  %v4803_v3 = vpop.f32.mrb[14].mxu0  ;;  %v4899_v45 = vpop.f32.mrb[14].mxu1  ;;  %v1844_v47 = vrot.slane %v6568_v39, 1  ;;  %v6577_v2 = vpack.c.bf16 %v1787_v37, %v1786_v59 }
 0x169   :  { %v1607_v49 = vmax.f32 %v1581_v60, 0.0  ;;  %v1582_v4 = vadd.f32 %v6519_v23, %v1549_v61  ;;  %v1583_v7 = vadd.f32 %v6519_v23, %v1550_v48  ;;  %v814_v9 = vpop.f32.mrb[15].mxu0  ;;  %v1321_v14 = vpop.f32.mrb[15].mxu1  ;;  %4977 = vmatmul.mubr.msk.bf16.gmra.mrb[32].mxu0 %vm1880_vm5, %v6568_v39  ;;  %v1788_v53 = vmul.f32 %v6505_v54, %v1606_v33 }
 0x16a   :  { %v1610_v21 = vmax.f32 %v1584_v0, 0.0  ;;  %v1485_v22 = vrot.slane %v1419_v1, 1  ;;  %v6584_v24 = vmax.f32 %v4803_v3, %v4899_v45  ;;  %v1420_v25 = vmax.f32 %v814_v9, %v1321_v14  ;;  %4980 = vmatprep.mubr.msk.bf16.mxu0 %vm6002_vm4, %v6001_v57  ;;  %v6596_v10 = vpop.permute.xlu1 %1739  ;;  %v6598_v12 = vpop.permute.xlu0 %1734 }
 0x16b   :  { %v1608_v26 = vmax.f32 %v1582_v4, 0.0  ;;  %v1609_v29 = vmax.f32 %v1583_v7, 0.0  ;;  %v1489_v30 = vrot.slane %v1421_v62, 1  ;;  %v6589_v31 = vsel %vm647_vm3, %v1843_v34, %v1844_v47 }
 0x16c   :  { %v1486_v32 = vsel %vm647_vm3, %v1483_v17, %v1485_v22  ;;  %v1491_v13 = vrot.slane %v6584_v24, 1  ;;  %v1487_v11 = vrot.slane %v1420_v25, 1  ;;  %4917 = vmatmul.mubr.msk.bf16.vlgmr.msra.gmra.mrb[28].mxu1 %vm1880_vm5, %v6589_v31  ;;  %v1846_v54 = vrot.slane %v6577_v2, 1 }
 0x16d   :  { %v1792_v16 = vmul.f32 %v6513_v18, %v1610_v21  ;;  %v1791_v20 = vmul.f32 %v6507_v55, %v1609_v29  ;;  %v1552_v33 = vmax.f32 %v6546_v27, %v1486_v32  ;;  %4920 = vmatprep.mubr.msk.bf16.mxu1 %vm6002_vm4, %v6001_v57  ;;  %v1789_v17 = vmul.f32 %v6503_v51, %v1607_v49 }
 0x16e   :  { %v1492_v35 = vsel %vm647_vm3, %v1489_v30, %v1491_v13  ;;  %v1488_v36 = vsel %vm647_vm3, %v1485_v22, %v1487_v11  ;;  %v1490_v34 = vsel %vm647_vm3, %v1487_v11, %v1489_v30  ;;  %v4806_v37 = vpop.f32.mrb[16].mxu0  ;;  %v4902_v38 = vpop.f32.mrb[16].mxu1  ;;  %5483 = vmatpush3.bf16.msra.mxu1 %v6476_v8  ;;  %v1790_v18 = vmul.f32 %v6509_v56, %v1608_v26 }
 0x16f   :  { %v1585_v55 = vadd.f32 %v6519_v23, %v1552_v33  ;;  %v1555_v27 = vmax.f32 %v1421_v62, %v1492_v35  ;;  %v1553_v50 = vmax.f32 %v1419_v1, %v1488_v36  ;;  %v1554_v46 = vmax.f32 %v1420_v25, %v1490_v34  ;;  %v827_v6 = vpop.f32.mrb[17].mxu0  ;;  %v1334_v44 = vpop.f32.mrb[17].mxu1  ;;  %5482 = vmatprep.subr.bf16.mxu1 %v6001_v57 }
 0x170   :  { %v1425_v51 = vmax.f32 %v4806_v37, %v4902_v38  ;;  %v1423_v42 = vmax.f32 %v827_v6, %v1334_v44  ;;  %v4807_v58 = vpop.f32.mrb[18].mxu0  ;;  %v4903_v59 = vpop.f32.mrb[18].mxu1  ;;  %v6613_v60 = vpack.c.bf16 %v1789_v17, %v1788_v53  ;;  %v6615_v61 = vpack.c.bf16 %v1791_v20, %v1790_v18 }
 0x171   :  { %v1611_v8 = vmax.f32 %v1585_v55, 0.0  ;;  %v1588_v56 = vadd.f32 %v6519_v23, %v1555_v27  ;;  %v1586_v48 = vadd.f32 %v6519_v23, %v1553_v50  ;;  %v1587_v62 = vadd.f32 %v6519_v23, %v1554_v46  ;;  %v830_v19 = vpop.f32.mrb[19].mxu0  ;;  %v1337_v63 = vpop.f32.mrb[19].mxu1  ;;  %4981 = vmatmul.mubr.msk.bf16.gmra.mrb[36].mxu0 %vm1880_vm5, %v6577_v2 }
 0x172   :  { %v1493_v0 = vrot.slane %v1423_v42, 1  ;;  %v6622_v1 = vmax.f32 %v4807_v58, %v4903_v59  ;;  %v1424_v3 = vmax.f32 %v830_v19, %v1337_v63  ;;  %v6627_v45 = vsel %vm647_vm3, %v1844_v47, %v1846_v54  ;;  %4984 = vmatprep.mubr.msk.bf16.mxu0 %vm6002_vm4, %v6001_v57  ;;  %5484 = vmatpush3.bf16.msra.mxu1 %v6483_v28  ;;  %v6638_v47 = vpop.permute.xlu1 %1749  ;;  %v6640_v25 = vpop.permute.xlu0 %1744 }
 0x173   :  { %v1793_v49 = vmul.f32 %v6511_v15, %v1611_v8  ;;  %v1612_v4 = vmax.f32 %v1586_v48, 0.0  ;;  %v1613_v7 = vmax.f32 %v1587_v62, 0.0  ;;  %v1497_v9 = vrot.slane %v1425_v51, 1  ;;  %5080 = vmatprep.subr.bf16.mxu1 %v6001_v57 }
 0x174   :  { %v1614_v14 = vmax.f32 %v1588_v56, 0.0  ;;  %v1494_v53 = vsel %vm647_vm3, %v1491_v13, %v1493_v0  ;;  %v1499_v21 = vrot.slane %v6622_v1, 1  ;;  %v1495_v22 = vrot.slane %v1424_v3, 1  ;;  %4921 = vmatmul.mubr.msk.bf16.gmra.mrb[32].mxu1 %vm1880_vm5, %v6627_v45 }
 0x175   :  { %v6642_v28 = vpack.c.bf16 %v1793_v49, %v1792_v16  ;;  %v1794_v15 = vmul.f32 %v6532_v52, %v1612_v4  ;;  %v1795_v26 = vmul.f32 %v6530_v41, %v1613_v7  ;;  %4924 = vmatprep.mubr.msk.bf16.mxu1 %vm6002_vm4, %v6001_v57  ;;  %v1848_v29 = vrot.slane %v6613_v60, 1 }
 0x176   :  { %v1556_v30 = vmax.f32 %v6584_v24, %v1494_v53  ;;  %v1500_v32 = vsel %vm647_vm3, %v1497_v9, %v1499_v21  ;;  %v1496_v13 = vsel %vm647_vm3, %v1493_v0, %v1495_v22  ;;  %v1498_v11 = vsel %vm647_vm3, %v1495_v22, %v1497_v9  ;;  %v4810_v20 = vpop.f32.mrb[20].mxu0  ;;  %v4906_v16 = vpop.f32.mrb[20].mxu1 }
 0x177   :  { %v6653_v33 = vpack.c.bf16 %v1795_v26, %v1794_v15  ;;  %v1559_v52 = vmax.f32 %v1425_v51, %v1500_v32  ;;  %v1557_v17 = vmax.f32 %v1423_v42, %v1496_v13  ;;  %v1558_v41 = vmax.f32 %v1424_v3, %v1498_v11  ;;  %v843_v35 = vpop.f32.mrb[21].mxu0  ;;  %v1350_v36 = vpop.f32.mrb[21].mxu1 }
 0x178   :  { %v1796_v34 = vmul.f32 %v6563_v40, %v1614_v14  ;;  %v1589_v37 = vadd.f32 %v6519_v23, %v1556_v30  ;;  %v1429_v24 = vmax.f32 %v4810_v20, %v4906_v16  ;;  %v1427_v38 = vmax.f32 %v843_v35, %v1350_v36  ;;  %v4811_v18 = vpop.f32.mrb[22].mxu0  ;;  %v4907_v55 = vpop.f32.mrb[22].mxu1 }
 0x179   :  { %v1592_v27 = vadd.f32 %v6519_v23, %v1559_v52  ;;  %v1590_v50 = vadd.f32 %v6519_v23, %v1557_v17  ;;  %v1591_v46 = vadd.f32 %v6519_v23, %v1558_v41  ;;  %v6660_v6 = vmax.f32 %v4811_v18, %v4907_v55  ;;  %v846_v44 = vpop.f32.mrb[23].mxu0  ;;  %v1353_v51 = vpop.f32.mrb[23].mxu1  ;;  %4985 = vmatmul.mubr.msk.bf16.gmra.mrb[40].mxu0 %vm1880_vm5, %v6613_v60 }
 0x17a   :  { %v1615_v40 = vmax.f32 %v1589_v37, 0.0  ;;  %v1501_v42 = vrot.slane %v1427_v38, 1  ;;  %v1428_v58 = vmax.f32 %v846_v44, %v1353_v51  ;;  %v6669_v59 = vsel %vm647_vm3, %v1846_v54, %v1848_v29  ;;  %4988 = vmatprep.mubr.msk.bf16.mxu0 %vm6002_vm4, %v6001_v57  ;;  %v1760_v49 = vpop.permute.xlu1 %1759  ;;  %v1755_v54 = vpop.permute.xlu0 %1754 }
 0x17b   :  { %v1616_v8 = vmax.f32 %v1590_v50, 0.0  ;;  %v1617_v56 = vmax.f32 %v1591_v46, 0.0  ;;  %v1505_v48 = vrot.slane %v1429_v24, 1  ;;  %v1507_v62 = vrot.slane %v6660_v6, 1 }
 0x17c   :  { %v1797_v19 = vmul.f32 %v6561_v43, %v1615_v40  ;;  %v1618_v63 = vmax.f32 %v1592_v27, 0.0  ;;  %v1502_v0 = vsel %vm647_vm3, %v1499_v21, %v1501_v42  ;;  %v1503_v3 = vrot.slane %v1428_v58, 1  ;;  %4925 = vmatmul.mubr.msk.bf16.gmra.mrb[36].mxu1 %vm1880_vm5, %v6669_v59 }
 0x17d   :  { %v1798_v4 = vmul.f32 %v6598_v12, %v1616_v8  ;;  %v1799_v7 = vmul.f32 %v6596_v10, %v1617_v56  ;;  %v1560_v9 = vmax.f32 %v6622_v1, %v1502_v0  ;;  %4928 = vmatprep.mubr.msk.bf16.mxu1 %vm6002_vm4, %v6001_v57  ;;  %v1850_v43 = vrot.slane %v6615_v61, 1 }
 0x17e   :  { %v6684_v14 = vpack.c.bf16 %v1797_v19, %v1796_v34  ;;  %v1508_v53 = vsel %vm647_vm3, %v1505_v48, %v1507_v62  ;;  %v1504_v21 = vsel %vm647_vm3, %v1501_v42, %v1503_v3  ;;  %v1506_v22 = vsel %vm647_vm3, %v1503_v3, %v1505_v48  ;;  %v4814_v15 = vpop.f32.mrb[24].mxu0  ;;  %v4910_v26 = vpop.f32.mrb[24].mxu1 }
 0x17f   :  { %v6689_v12 = vpack.c.bf16 %v1799_v7, %v1798_v4  ;;  %v1593_v10 = vadd.f32 %v6519_v23, %v1560_v9  ;;  %v1563_v1 = vmax.f32 %v1429_v24, %v1508_v53  ;;  %v1561_v30 = vmax.f32 %v1427_v38, %v1504_v21  ;;  %v859_v32 = vpop.f32.mrb[25].mxu0  ;;  %v1366_v13 = vpop.f32.mrb[25].mxu1 }
 0x180   :  { %v1562_v11 = vmax.f32 %v1428_v58, %v1506_v22  ;;  %v1433_v20 = vmax.f32 %v4814_v15, %v4910_v26  ;;  %v1431_v16 = vmax.f32 %v859_v32, %v1366_v13  ;;  %v4815_v52 = vpop.f32.mrb[26].mxu0  ;;  %v4911_v17 = vpop.f32.mrb[26].mxu1  ;;  %v1800_v24 = vmul.f32 %v6640_v25, %v1618_v63 }
 0x181   :  { %v1619_v41 = vmax.f32 %v1593_v10, 0.0  ;;  %v1596_v35 = vadd.f32 %v6519_v23, %v1563_v1  ;;  %v1594_v36 = vadd.f32 %v6519_v23, %v1561_v30  ;;  %v862_v34 = vpop.f32.mrb[27].mxu0  ;;  %v1369_v37 = vpop.f32.mrb[27].mxu1  ;;  %4989 = vmatmul.mubr.msk.bf16.gmra.mrb[44].mxu0 %vm1880_vm5, %v6615_v61  ;;  %v6706_v44 = vsel %vm647_vm3, %v1848_v29, %v1850_v43 }
 0x182   :  { %v1595_v38 = vadd.f32 %v6519_v23, %v1562_v11  ;;  %v1509_v18 = vrot.slane %v1431_v16, 1  ;;  %v1432_v55 = vmax.f32 %v862_v34, %v1369_v37  ;;  %5028 = vmatprep.mubr.msk.bf16.mxu0 %vm6002_vm4, %v6001_v57  ;;  %v1513_v46 = vrot.slane %v1433_v20, 1  ;;  %v1770_v56 = vpop.permute.xlu1 %1769  ;;  %v1765_v48 = vpop.permute.xlu0 %1764 }
 0x183   :  { %v1801_v27 = vmul.f32 %v6638_v47, %v1619_v41  ;;  %v1620_v50 = vmax.f32 %v1594_v36, 0.0  ;;  %v2250_v42 = vrot.slane %v6568_v39, 2  ;;  %v2249_v29 = vrot.slane %v6540_v5, 2 }
 0x184   :  { %v1621_v51 = vmax.f32 %v1595_v38, 0.0  ;;  %v1510_v25 = vsel %vm647_vm3, %v1507_v62, %v1509_v18  ;;  %v1511_v40 = vrot.slane %v1432_v55, 1  ;;  %4929 = vmatmul.mubr.msk.bf16.gmra.mrb[40].mxu1 %vm1880_vm5, %v6706_v44  ;;  %v1622_v19 = vmax.f32 %v1596_v35, 0.0 }
 0x185   :  { %v6712_v58 = vpack.c.bf16 %v1801_v27, %v1800_v24  ;;  %v1802_v47 = vmul.f32 %v1755_v54, %v1620_v50  ;;  %v1564_v8 = vmax.f32 %v6660_v6, %v1510_v25  ;;  %4932 = vmatprep.mubr.msk.bf16.mxu1 %vm6002_vm4, %v6001_v57  ;;  %v1852_v54 = vrot.slane %v6642_v28, 1 }
 0x186   :  { %v1803_v62 = vmul.f32 %v1760_v49, %v1621_v51  ;;  %v1512_v63 = vsel %vm647_vm3, %v1509_v18, %v1511_v40  ;;  %v1514_v0 = vsel %vm647_vm3, %v1511_v40, %v1513_v46  ;;  %v6725_v9 = vsel %vm2248_vm6, %v2249_v29, %v2250_v42  ;;  %v1780_v30 = vpop.permute.xlu1 %1779  ;;  %v1775_v32 = vpop.permute.xlu0 %1774 }
 0x187   :  { %v1597_v3 = vadd.f32 %v6519_v23, %v1564_v8  ;;  %v1565_v4 = vmax.f32 %v1431_v16, %v1512_v63  ;;  %v1566_v7 = vmax.f32 %v1432_v55, %v1514_v0  ;;  %v1804_v22 = vmul.f32 %v1765_v48, %v1622_v19 }
 0x188   :  { %v6722_v6 = vpack.c.bf16 %v1803_v62, %v1802_v47  ;;  %v6736_v1 = vsel %vm647_vm3, %v1850_v43, %v1852_v54  ;;  %v1854_v52 = vrot.slane %v6653_v33, 1  ;;  %v2254_v41 = vrot.slane %v6613_v60, 2 }
 0x189   :  { %v1623_v53 = vmax.f32 %v1597_v3, 0.0  ;;  %v1598_v21 = vadd.f32 %v6519_v23, %v1565_v4  ;;  %v1599_v49 = vadd.f32 %v6519_v23, %v1566_v7  ;;  %5029 = vmatmul.mubr.msk.bf16.vlgmr.msra.gmra.mrb[28].mxu0 %vm1880_vm5, %v6725_v9  ;;  %v2252_v23 = vrot.slane %v6577_v2, 2 }
 0x18a   :  { %5032 = vmatprep.mubr.msk.bf16.mxu0 %vm6002_vm4, %v6001_v57  ;;  %v6756_v17 = vsel %vm647_vm3, %v1852_v54, %v1854_v52  ;;  %v1856_v35 = vrot.slane %v6684_v14, 1  ;;  %v2256_v37 = vrot.slane %v6615_v61, 2  ;;  %v1858_v24 = vrot.slane %v6689_v12, 1  ;;  %v5956_v54 = vld [vmem:[%s7556_s4 + $0x40] sm:$0xff]  }
 0x18b   :  { %v1805_v15 = vmul.f32 %v1770_v56, %v1623_v53  ;;  %v1624_v26 = vmax.f32 %v1598_v21, 0.0  ;;  %v1625_v10 = vmax.f32 %v1599_v49, 0.0  ;;  %v6749_v43 = vsel %vm2248_vm6, %v2250_v42, %v2252_v23  ;;  %v5957_v21 = vld [vmem:[%s7556_s4 + $0x48] sm:$0xff]  }
 0x18c   :  { %4933 = vmatmul.mubr.msk.bf16.gmra.mrb[44].mxu1 %vm1880_vm5, %v6736_v1  ;;  %v6765_v36 = vsel %vm2248_vm6, %v2252_v23, %v2254_v41  ;;  %v6772_v34 = vsel %vm647_vm3, %v1854_v52, %v1856_v35  ;;  %v6781_v38 = vsel %vm2248_vm6, %v2254_v41, %v2256_v37  ;;  %v6788_v18 = vsel %vm647_vm3, %v1856_v35, %v1858_v24 }
 0x18d   :  { %v6741_v13 = vpack.c.bf16 %v1805_v15, %v1804_v22  ;;  %v1806_v11 = vmul.f32 %v1775_v32, %v1624_v26  ;;  %v1807_v20 = vmul.f32 %v1780_v30, %v1625_v10  ;;  %4936 = vmatprep.mubr.msk.bf16.mxu1 %vm6002_vm4, %v6001_v57  ;;  %v2258_v55 = vrot.slane %v6642_v28, 2  ;;  %v5958_v26 = vld [vmem:[%s7556_s4 + $0x30] sm:$0xff]   ;;  %v5959_v10 = vld [vmem:[%s7556_s4 + $0x38] sm:$0xff]  }
 0x18e   :  { %v1860_v27 = vrot.slane %v6712_v58, 1  ;;  %v2260_v51 = vrot.slane %v6653_v33, 2  ;;  %v1862_v25 = vrot.slane %v6722_v6, 1  ;;  %v2262_v47 = vrot.slane %v6684_v14, 2 }
 0x18f   :  { %v6745_v16 = vpack.c.bf16 %v1807_v20, %v1806_v11  ;;  %v6797_v50 = vsel %vm2248_vm6, %v2256_v37, %v2258_v55  ;;  %v1864_v8 = vrot.slane %v6741_v13, 1  ;;  %v2264_v48 = vrot.slane %v6689_v12, 2 }
 0x190   :  { %v6804_v46 = vsel %vm647_vm3, %v1858_v24, %v1860_v27  ;;  %v6813_v40 = vsel %vm2248_vm6, %v2258_v55, %v2260_v51  ;;  %v6820_v42 = vsel %vm647_vm3, %v1860_v27, %v1862_v25  ;;  %v6829_v29 = vsel %vm2248_vm6, %v2260_v51, %v2262_v47 }
 0x191   :  { %5033 = vmatmul.mubr.msk.bf16.gmra.mrb[32].mxu0 %vm1880_vm5, %v6749_v43  ;;  %v6836_v56 = vsel %vm647_vm3, %v1862_v25, %v1864_v8  ;;  %v6844_v19 = vrot.slane %v6745_v16, 1  ;;  %v6847_v62 = vsel %vm2248_vm6, %v2262_v47, %v2264_v48  ;;  %v2266_v0 = vrot.slane %v6712_v58, 2 }
 0x192   :  { %5036 = vmatprep.mubr.msk.bf16.mxu0 %vm6002_vm4, %v6001_v57  ;;  %v2268_v4 = vrot.slane %v6722_v6, 2  ;;  %v2270_v53 = vrot.slane %v6741_v13, 2  ;;  %v6904_v22 = vrot.slane %v6745_v16, 2 }
 0x193   :  { %v6855_v63 = vsel %vm647_vm3, %v1864_v8, %v6844_v19  ;;  %v6863_v3 = vsel %vm2248_vm6, %v2264_v48, %v2266_v0 }
 0x194   :  { %4937 = vmatmul.mubr.msk.bf16.gmra.mrb[48].mxu1 %vm1880_vm5, %v6756_v17  ;;  %v6875_v7 = vsel %vm2248_vm6, %v2266_v0, %v2268_v4  ;;  %v6894_v49 = vsel %vm2248_vm6, %v2268_v4, %v2270_v53  ;;  %v6910_v15 = vsel %vm2248_vm6, %v2270_v53, %v6904_v22 }
 0x195   :  { %4940 = vmatprep.mubr.msk.bf16.mxu1 %vm6002_vm4, %v6001_v57 }
 0x199   :  { %5037 = vmatmul.mubr.msk.bf16.gmra.mrb[36].mxu0 %vm1880_vm5, %v6765_v36 }
 0x19a   :  { %5040 = vmatprep.mubr.msk.bf16.mxu0 %vm6002_vm4, %v6001_v57 }
 0x19c   :  { %4941 = vmatmul.mubr.msk.bf16.gmra.mrb[52].mxu1 %vm1880_vm5, %v6772_v34 }
 0x19d   :  { %4944 = vmatprep.mubr.msk.bf16.mxu1 %vm6002_vm4, %v6001_v57 }
 0x1a1   :  { %5041 = vmatmul.mubr.msk.bf16.gmra.mrb[40].mxu0 %vm1880_vm5, %v6781_v38 }
 0x1a2   :  { %5044 = vmatprep.mubr.msk.bf16.mxu0 %vm6002_vm4, %v6001_v57 }
 0x1a4   :  { %4945 = vmatmul.mubr.msk.bf16.gmra.mrb[56].mxu1 %vm1880_vm5, %v6788_v18 }
 0x1a5   :  { %4948 = vmatprep.mubr.msk.bf16.mxu1 %vm6002_vm4, %v6001_v57 }
 0x1a9   :  { %5045 = vmatmul.mubr.msk.bf16.gmra.mrb[44].mxu0 %vm1880_vm5, %v6797_v50 }
 0x1aa   :  { %5048 = vmatprep.mubr.msk.bf16.mxu0 %vm6002_vm4, %v6001_v57 }
 0x1ac   :  { %4949 = vmatmul.mubr.msk.bf16.gmra.mrb[60].mxu1 %vm1880_vm5, %v6804_v46 }
 0x1ad   :  { %4952 = vmatprep.mubr.msk.bf16.mxu1 %vm6002_vm4, %v6001_v57 }
 0x1b1   :  { %5049 = vmatmul.mubr.msk.bf16.gmra.mrb[48].mxu0 %vm1880_vm5, %v6813_v40 }
 0x1b2   :  { %5052 = vmatprep.mubr.msk.bf16.mxu0 %vm6002_vm4, %v6001_v57 }
 0x1b4   :  { %4953 = vmatmul.mubr.msk.bf16.gmra.mrb[64].mxu1 %vm1880_vm5, %v6820_v42 }
 0x1b5   :  { %4956 = vmatprep.mubr.msk.bf16.mxu1 %vm6002_vm4, %v6001_v57 }
 0x1b9   :  { %5053 = vmatmul.mubr.msk.bf16.gmra.mrb[52].mxu0 %vm1880_vm5, %v6829_v29 }
 0x1ba   :  { %5056 = vmatprep.mubr.msk.bf16.mxu0 %vm6002_vm4, %v6001_v57 }
 0x1bc   :  { %4957 = vmatmul.mubr.msk.bf16.gmra.mrb[68].mxu1 %vm1880_vm5, %v6836_v56 }
 0x1bd   :  { %4960 = vmatprep.mubr.msk.bf16.mxu1 %vm6002_vm4, %v6001_v57 }
 0x1c1   :  { %5057 = vmatmul.mubr.msk.bf16.gmra.mrb[56].mxu0 %vm1880_vm5, %v6847_v62 }
 0x1c2   :  { %5060 = vmatprep.mubr.msk.bf16.mxu0 %vm6002_vm4, %v6001_v57 }
 0x1c4   :  { %4961 = vmatmul.mubr.msk.bf16.gmra.mrb[72].mxu1 %vm1880_vm5, %v6855_v63 }
 0x1c5   :  { %4964 = vmatprep.mubr.msk.bf16.mxu1 %vm6002_vm4, %v6001_v57 }
 0x1c9   :  { %5061 = vmatmul.mubr.msk.bf16.gmra.mrb[60].mxu0 %vm1880_vm5, %v6863_v3 }
 0x1ca   :  { %5064 = vmatprep.mubr.msk.bf16.mxu0 %vm6002_vm4, %v6001_v57 }
 0x1cc   :  { %4965 = vmatmul.mubr.msk.bf16.gmra.mrb[76].mxu1 %vm1880_vm5, %v6844_v19 }
 0x1cd   :  { %4992 = vmatprep.mubr.msk.bf16.mxu1 %vm6002_vm4, %v6001_v57 }
 0x1d1   :  { %5065 = vmatmul.mubr.msk.bf16.gmra.mrb[64].mxu0 %vm1880_vm5, %v6875_v7 }
 0x1d2   :  { %5068 = vmatprep.mubr.msk.bf16.mxu0 %vm6002_vm4, %v6001_v57 }
 0x1d4   :  { %4993 = vmatmul.mubr.msk.bf16.vlgmr.msra.gmra.mrb[48].mxu1 %vm1880_vm5, %v6642_v28 }
 0x1d5   :  { %4996 = vmatprep.mubr.msk.bf16.mxu1 %vm6002_vm4, %v6001_v57  ;;  %5081 = vmatpush3.bf16.msra.mxu1 %v5956_v54 }
 0x1d6   :  { %5082 = vmatprep.subr.bf16.mxu1 %v6001_v57 }
 0x1d9   :  { %5069 = vmatmul.mubr.msk.bf16.gmra.mrb[68].mxu0 %vm1880_vm5, %v6894_v49  ;;  %5083 = vmatpush3.bf16.msra.mxu1 %v5957_v21 }
 0x1da   :  { %5072 = vmatprep.mubr.msk.bf16.mxu0 %vm6002_vm4, %v6001_v57  ;;  %5136 = vmatprep.subr.bf16.mxu1 %v6001_v57 }
 0x1dc   :  { %4997 = vmatmul.mubr.msk.bf16.gmra.mrb[52].mxu1 %vm1880_vm5, %v6653_v33 }
 0x1dd   :  { %5000 = vmatprep.mubr.msk.bf16.mxu1 %vm6002_vm4, %v6001_v57 }
 0x1e1   :  { %5073 = vmatmul.mubr.msk.bf16.gmra.mrb[72].mxu0 %vm1880_vm5, %v6910_v15 }
 0x1e2   :  { %5076 = vmatprep.mubr.msk.bf16.mxu0 %vm6002_vm4, %v6001_v57 }
 0x1e4   :  { %5001 = vmatmul.mubr.msk.bf16.gmra.mrb[56].mxu1 %vm1880_vm5, %v6684_v14 }
 0x1e5   :  { %5004 = vmatprep.mubr.msk.bf16.mxu1 %vm6002_vm4, %v6001_v57 }
 0x1e9   :  { %5077 = vmatmul.mubr.msk.bf16.gmra.mrb[76].mxu0 %vm1880_vm5, %v6904_v22 }
 0x1ea   :  { %5252 = vmatprep.mubr.msk.bf16.mxu0 %vm6002_vm4, %v6001_v57 }
 0x1ec   :  { %5005 = vmatmul.mubr.msk.bf16.gmra.mrb[60].mxu1 %vm1880_vm5, %v6689_v12 }
 0x1ed   :  { %5008 = vmatprep.mubr.msk.bf16.mxu1 %vm6002_vm4, %v6001_v57 }
 0x1f4   :  { %5009 = vmatmul.mubr.msk.bf16.gmra.mrb[64].mxu1 %vm1880_vm5, %v6712_v58 }
 0x1f5   :  { %5012 = vmatprep.mubr.msk.bf16.mxu1 %vm6002_vm4, %v6001_v57 }
 0x1fc   :  { %5013 = vmatmul.mubr.msk.bf16.gmra.mrb[68].mxu1 %vm1880_vm5, %v6722_v6 }
 0x1fd   :  { %5016 = vmatprep.mubr.msk.bf16.mxu1 %vm6002_vm4, %v6001_v57 }
 0x204   :  { %5017 = vmatmul.mubr.msk.bf16.gmra.mrb[72].mxu1 %vm1880_vm5, %v6741_v13 }
 0x205   :  { %5020 = vmatprep.mubr.msk.bf16.mxu1 %vm6002_vm4, %v6001_v57 }
 0x20c   :  { %5021 = vmatmul.mubr.msk.bf16.gmra.mrb[76].mxu1 %vm1880_vm5, %v6745_v16 }
 0x20d   :  { %5084 = vmatprep.mubr.msk.bf16.mxu1 %vm6002_vm4, %v6001_v57 }
 0x214   :  { %5085 = vmatmul.mubr.msk.bf16.vlgmr.msra.gmra.mrb[80].mxu1 %vm1880_vm5, %v6589_v31 }
 0x215   :  { %5088 = vmatprep.mubr.msk.bf16.mxu1 %vm6002_vm4, %v6001_v57  ;;  %5137 = vmatpush3.bf16.msra.mxu1 %v5958_v26 }
 0x216   :  { %5138 = vmatprep.subr.bf16.mxu1 %v6001_v57 }
 0x219   :  { %5139 = vmatpush3.bf16.msra.mxu1 %v5959_v10 }
 0x21a   :  { %5192 = vmatprep.subr.bf16.mxu1 %v6001_v57 }
 0x21c   :  { %5089 = vmatmul.mubr.msk.bf16.gmra.mrb[84].mxu1 %vm1880_vm5, %v6627_v45 }
 0x21d   :  { %5092 = vmatprep.mubr.msk.bf16.mxu1 %vm6002_vm4, %v6001_v57 }
 0x224   :  { %5093 = vmatmul.mubr.msk.bf16.gmra.mrb[88].mxu1 %vm1880_vm5, %v6669_v59 }
 0x225   :  { %5096 = vmatprep.mubr.msk.bf16.mxu1 %vm6002_vm4, %v6001_v57 }
 0x22c   :  { %5097 = vmatmul.mubr.msk.bf16.gmra.mrb[92].mxu1 %vm1880_vm5, %v6706_v44 }
 0x22d   :  { %5100 = vmatprep.mubr.msk.bf16.mxu1 %vm6002_vm4, %v6001_v57 }
 0x234   :  { %5101 = vmatmul.mubr.msk.bf16.gmra.mrb[96].mxu1 %vm1880_vm5, %v6736_v1 }
 0x235   :  { %5104 = vmatprep.mubr.msk.bf16.mxu1 %vm6002_vm4, %v6001_v57 }
 0x23c   :  { %5105 = vmatmul.mubr.msk.bf16.gmra.mrb[100].mxu1 %vm1880_vm5, %v6756_v17 }
 0x23d   :  { %5108 = vmatprep.mubr.msk.bf16.mxu1 %vm6002_vm4, %v6001_v57 }
 0x23f   :  { %v1954_v31 = vpop.f32.mrb[28].mxu1 }
 0x240   :  { %v4918_v45 = vpop.f32.mrb[29].mxu1 }
 0x241   :  { %v1957_v59 = vpop.f32.mrb[30].mxu1 }
 0x242   :  { %v4919_v30 = vpop.f32.mrb[31].mxu1 }
 0x244   :  { %5109 = vmatmul.mubr.msk.bf16.gmra.mrb[104].mxu1 %vm1880_vm5, %v6772_v34 }
 0x245   :  { %5112 = vmatprep.mubr.msk.bf16.mxu1 %vm6002_vm4, %v6001_v57 }
 0x247   :  { %v1962_v44 = vpop.f32.mrb[32].mxu1 }
 0x248   :  { %v4922_v1 = vpop.f32.mrb[33].mxu1 }
 0x249   :  { %v1965_v32 = vpop.f32.mrb[34].mxu1 }
 0x24a   :  { %v4923_v23 = vpop.f32.mrb[35].mxu1 }
 0x24c   :  { %5113 = vmatmul.mubr.msk.bf16.gmra.mrb[108].mxu1 %vm1880_vm5, %v6788_v18 }
 0x24d   :  { %5116 = vmatprep.mubr.msk.bf16.mxu1 %vm6002_vm4, %v6001_v57 }
 0x24f   :  { %v1970_v11 = vpop.f32.mrb[36].mxu1 }
 0x250   :  { %v4926_v20 = vpop.f32.mrb[37].mxu1 }
 0x251   :  { %v1973_v52 = vpop.f32.mrb[38].mxu1 }
 0x252   :  { %v4927_v17 = vpop.f32.mrb[39].mxu1 }
 0x253   :  { %v5961_v17 = vld [vmem:[%s7556_s4 + $0x58] sm:$0xff]  }
 0x254   :  { %5117 = vmatmul.mubr.msk.bf16.gmra.mrb[112].mxu1 %vm1880_vm5, %v6804_v46 }
 0x255   :  { %5120 = vmatprep.mubr.msk.bf16.mxu1 %vm6002_vm4, %v6001_v57 }
 0x257   :  { %v1978_v41 = vpop.f32.mrb[40].mxu1 }
 0x258   :  { %v4930_v35 = vpop.f32.mrb[41].mxu1 }
 0x259   :  { %v1981_v34 = vpop.f32.mrb[42].mxu1 }
 0x25a   :  { %v4931_v37 = vpop.f32.mrb[43].mxu1 }
 0x25c   :  { %5121 = vmatmul.mubr.msk.bf16.gmra.mrb[116].mxu1 %vm1880_vm5, %v6820_v42  ;;  %v2359_v24 = vpop.f32.mrb[28].mxu0 }
 0x25d   :  { %v6990_v18 = vadd.f32 %v2359_v24, %v1954_v31  ;;  %v5030_v55 = vpop.f32.mrb[29].mxu0  ;;  %5124 = vmatprep.mubr.msk.bf16.mxu1 %vm6002_vm4, %v6001_v57 }
 0x25e   :  { %v2362_v27 = vpop.f32.mrb[30].mxu0 }
 0x25f   :  { %v1986_v51 = vpop.f32.mrb[44].mxu1  ;;  %v6994_v46 = vadd.f32 %v2362_v27, %v1957_v59  ;;  %v5031_v25 = vpop.f32.mrb[31].mxu0 }
 0x260   :  { %v4934_v47 = vpop.f32.mrb[45].mxu1 }
 0x261   :  { %v1989_v8 = vpop.f32.mrb[46].mxu1 }
 0x262   :  { %v4935_v48 = vpop.f32.mrb[47].mxu1 }
 0x264   :  { %5125 = vmatmul.mubr.msk.bf16.gmra.mrb[120].mxu1 %vm1880_vm5, %v6836_v56  ;;  %v2367_v0 = vpop.f32.mrb[32].mxu0 }
 0x265   :  { %v6998_v42 = vadd.f32 %v2367_v0, %v1962_v44  ;;  %v5034_v4 = vpop.f32.mrb[33].mxu0  ;;  %5128 = vmatprep.mubr.msk.bf16.mxu1 %vm6002_vm4, %v6001_v57 }
 0x266   :  { %v2370_v54 = vpop.f32.mrb[34].mxu0 }
 0x267   :  { %v7002_v53 = vadd.f32 %v2370_v54, %v1965_v32  ;;  %v5035_v21 = vpop.f32.mrb[35].mxu0 }
 0x26c   :  { %5129 = vmatmul.mubr.msk.bf16.gmra.mrb[124].mxu1 %vm1880_vm5, %v6855_v63  ;;  %v2375_v26 = vpop.f32.mrb[36].mxu0 }
 0x26d   :  { %v7006_v10 = vadd.f32 %v2375_v26, %v1970_v11  ;;  %v5038_v31 = vpop.f32.mrb[37].mxu0  ;;  %5132 = vmatprep.mubr.msk.bf16.mxu1 %vm6002_vm4, %v6001_v57  ;;  %v5960_v11 = vld [vmem:[%s7556_s4 + $0x50] sm:$0xff]  }
 0x26e   :  { %v2378_v56 = vpop.f32.mrb[38].mxu0 }
 0x26f   :  { %v7010_v45 = vadd.f32 %v2378_v56, %v1973_v52  ;;  %v5039_v59 = vpop.f32.mrb[39].mxu0 }
 0x274   :  { %5133 = vmatmul.mubr.msk.bf16.gmra.mrb[128].mxu1 %vm1880_vm5, %v6844_v19  ;;  %v2383_v30 = vpop.f32.mrb[40].mxu0 }
 0x275   :  { %v7014_v44 = vadd.f32 %v2383_v30, %v1978_v41  ;;  %v5042_v1 = vpop.f32.mrb[41].mxu0  ;;  %5140 = vmatprep.mubr.msk.bf16.mxu1 %vm6002_vm4, %v6001_v57 }
 0x276   :  { %v2386_v63 = vpop.f32.mrb[42].mxu0 }
 0x277   :  { %v7018_v32 = vadd.f32 %v2386_v63, %v1981_v34  ;;  %v5043_v23 = vpop.f32.mrb[43].mxu0 }
 0x27c   :  { %5141 = vmatmul.mubr.msk.bf16.vlgmr.msra.gmra.mrb[80].mxu1 %vm1880_vm5, %v6540_v5  ;;  %v2391_v20 = vpop.f32.mrb[44].mxu0 }
 0x27d   :  { %v7025_v19 = vadd.f32 %v2391_v20, %v1986_v51  ;;  %v5046_v52 = vpop.f32.mrb[45].mxu0  ;;  %5144 = vmatprep.mubr.msk.bf16.mxu1 %vm6002_vm4, %v6001_v57  ;;  %5193 = vmatpush3.bf16.msra.mxu1 %v5960_v11 }
 0x27e   :  { %v2394_v41 = vpop.f32.mrb[46].mxu0  ;;  %5194 = vmatprep.subr.bf16.mxu1 %v6001_v57 }
 0x27f   :  { %v7033_v35 = vadd.f32 %v2394_v41, %v1989_v8  ;;  %v5047_v34 = vpop.f32.mrb[47].mxu0 }
 0x281   :  { %5195 = vmatpush3.bf16.msra.mxu1 %v5961_v17 }
 0x284   :  { %5145 = vmatmul.mubr.msk.bf16.gmra.mrb[84].mxu1 %vm1880_vm5, %v6568_v39  ;;  %v2399_v5 = vpop.f32.mrb[48].mxu0 }
 0x285   :  { %v5050_v37 = vpop.f32.mrb[49].mxu0  ;;  %5148 = vmatprep.mubr.msk.bf16.mxu1 %vm6002_vm4, %v6001_v57 }
 0x286   :  { %v2402_v24 = vpop.f32.mrb[50].mxu0 }
 0x287   :  { %v5051_v55 = vpop.f32.mrb[51].mxu0 }
 0x28c   :  { %5149 = vmatmul.mubr.msk.bf16.gmra.mrb[88].mxu1 %vm1880_vm5, %v6577_v2  ;;  %v2407_v27 = vpop.f32.mrb[52].mxu0 }
 0x28d   :  { %v5054_v51 = vpop.f32.mrb[53].mxu0  ;;  %5152 = vmatprep.mubr.msk.bf16.mxu1 %vm6002_vm4, %v6001_v57 }
 0x28e   :  { %v2410_v25 = vpop.f32.mrb[54].mxu0 }
 0x28f   :  { %v5055_v47 = vpop.f32.mrb[55].mxu0 }
 0x294   :  { %5153 = vmatmul.mubr.msk.bf16.gmra.mrb[92].mxu1 %vm1880_vm5, %v6613_v60  ;;  %v2415_v39 = vpop.f32.mrb[56].mxu0 }
 0x295   :  { %v5058_v8 = vpop.f32.mrb[57].mxu0  ;;  %5156 = vmatprep.mubr.msk.bf16.mxu1 %vm6002_vm4, %v6001_v57 }
 0x296   :  { %v2418_v48 = vpop.f32.mrb[58].mxu0 }
 0x297   :  { %v5059_v0 = vpop.f32.mrb[59].mxu0 }
 0x29c   :  { %5157 = vmatmul.mubr.msk.bf16.gmra.mrb[96].mxu1 %vm1880_vm5, %v6615_v61  ;;  %v2423_v2 = vpop.f32.mrb[60].mxu0 }
 0x29d   :  { %v5062_v4 = vpop.f32.mrb[61].mxu0  ;;  %5160 = vmatprep.mubr.msk.bf16.mxu1 %vm6002_vm4, %v6001_v57 }
 0x29e   :  { %v2426_v54 = vpop.f32.mrb[62].mxu0 }
 0x29f   :  { %v5063_v21 = vpop.f32.mrb[63].mxu0 }
 0x2a4   :  { %5161 = vmatmul.mubr.msk.bf16.gmra.mrb[100].mxu1 %vm1880_vm5, %v6642_v28  ;;  %v2431_v60 = vpop.f32.mrb[64].mxu0 }
 0x2a5   :  { %v5066_v26 = vpop.f32.mrb[65].mxu0  ;;  %5164 = vmatprep.mubr.msk.bf16.mxu1 %vm6002_vm4, %v6001_v57 }
 0x2a6   :  { %v2434_v31 = vpop.f32.mrb[66].mxu0 }
 0x2a7   :  { %v2181_v56 = vpop.f32.mrb[48].mxu1  ;;  %v5067_v59 = vpop.f32.mrb[67].mxu0 }
 0x2a8   :  { %v7055_v30 = vadd.f32 %v2399_v5, %v2181_v56  ;;  %v4994_v61 = vpop.f32.mrb[49].mxu1 }
 0x2a9   :  { %v2184_v1 = vpop.f32.mrb[50].mxu1 }
 0x2aa   :  { %v7057_v63 = vadd.f32 %v2402_v24, %v2184_v1  ;;  %v4995_v23 = vpop.f32.mrb[51].mxu1 }
 0x2ac   :  { %5165 = vmatmul.mubr.msk.bf16.gmra.mrb[104].mxu1 %vm1880_vm5, %v6653_v33  ;;  %v2439_v11 = vpop.f32.mrb[68].mxu0 }
 0x2ad   :  { %v5070_v28 = vpop.f32.mrb[69].mxu0  ;;  %5168 = vmatprep.mubr.msk.bf16.mxu1 %vm6002_vm4, %v6001_v57 }
 0x2ae   :  { %v2442_v20 = vpop.f32.mrb[70].mxu0 }
 0x2af   :  { %v2189_v52 = vpop.f32.mrb[52].mxu1  ;;  %v5071_v17 = vpop.f32.mrb[71].mxu0 }
 0x2b0   :  { %v7063_v41 = vadd.f32 %v2407_v27, %v2189_v52  ;;  %v4998_v34 = vpop.f32.mrb[53].mxu1 }
 0x2b1   :  { %v2192_v5 = vpop.f32.mrb[54].mxu1 }
 0x2b2   :  { %v7065_v37 = vadd.f32 %v2410_v25, %v2192_v5  ;;  %v4999_v24 = vpop.f32.mrb[55].mxu1 }
 0x2b4   :  { %5169 = vmatmul.mubr.msk.bf16.gmra.mrb[108].mxu1 %vm1880_vm5, %v6684_v14  ;;  %v2447_v55 = vpop.f32.mrb[72].mxu0 }
 0x2b5   :  { %v5074_v33 = vpop.f32.mrb[73].mxu0  ;;  %5172 = vmatprep.mubr.msk.bf16.mxu1 %vm6002_vm4, %v6001_v57 }
 0x2b6   :  { %v2450_v51 = vpop.f32.mrb[74].mxu0 }
 0x2b7   :  { %v2197_v47 = vpop.f32.mrb[56].mxu1  ;;  %v5075_v8 = vpop.f32.mrb[75].mxu0 }
 0x2b8   :  { %v7071_v0 = vadd.f32 %v2415_v39, %v2197_v47  ;;  %v5002_v27 = vpop.f32.mrb[57].mxu1 }
 0x2b9   :  { %v2200_v4 = vpop.f32.mrb[58].mxu1 }
 0x2ba   :  { %v7073_v21 = vadd.f32 %v2418_v48, %v2200_v4  ;;  %v5003_v25 = vpop.f32.mrb[59].mxu1 }
 0x2bc   :  { %5173 = vmatmul.mubr.msk.bf16.gmra.mrb[112].mxu1 %vm1880_vm5, %v6689_v12  ;;  %v2455_v26 = vpop.f32.mrb[76].mxu0  ;;  %v5962_v12 = vld [vmem:[%s7558_s6 + $0x10] sm:$0xff]  }
 0x2bd   :  { %v5078_v14 = vpop.f32.mrb[77].mxu0  ;;  %5176 = vmatprep.mubr.msk.bf16.mxu1 %vm6002_vm4, %v6001_v57  ;;  %5249 = vmatpush3.bf16.msra.mxu0 %v5962_v12 }
 0x2be   :  { %v2458_v56 = vpop.f32.mrb[78].mxu0  ;;  %5250 = vmatprep.subr.bf16.mxu0 %v6001_v57 }
 0x2bf   :  { %v2205_v59 = vpop.f32.mrb[60].mxu1  ;;  %v5079_v61 = vpop.f32.mrb[79].mxu0 }
 0x2c0   :  { %v7079_v1 = vadd.f32 %v2423_v2, %v2205_v59  ;;  %v5006_v39 = vpop.f32.mrb[61].mxu1 }
 0x2c1   :  { %v2208_v23 = vpop.f32.mrb[62].mxu1 }
 0x2c2   :  { %v7081_v28 = vadd.f32 %v2426_v54, %v2208_v23  ;;  %v5007_v48 = vpop.f32.mrb[63].mxu1 }
 0x2c4   :  { %5177 = vmatmul.mubr.msk.bf16.gmra.mrb[116].mxu1 %vm1880_vm5, %v6712_v58 }
 0x2c5   :  { %5180 = vmatprep.mubr.msk.bf16.mxu1 %vm6002_vm4, %v6001_v57 }
 0x2c7   :  { %v2213_v52 = vpop.f32.mrb[64].mxu1 }
 0x2c8   :  { %v7091_v2 = vadd.f32 %v2431_v60, %v2213_v52  ;;  %v5010_v17 = vpop.f32.mrb[65].mxu1 }
 0x2c9   :  { %v2216_v54 = vpop.f32.mrb[66].mxu1 }
 0x2ca   :  { %v7093_v34 = vadd.f32 %v2434_v31, %v2216_v54  ;;  %v5011_v5 = vpop.f32.mrb[67].mxu1 }
 0x2cc   :  { %5181 = vmatmul.mubr.msk.bf16.gmra.mrb[120].mxu1 %vm1880_vm5, %v6722_v6 }
 0x2cd   :  { %5184 = vmatprep.mubr.msk.bf16.mxu1 %vm6002_vm4, %v6001_v57 }
 0x2cf   :  { %v2221_v58 = vpop.f32.mrb[68].mxu1 }
 0x2d0   :  { %v7099_v24 = vadd.f32 %v2439_v11, %v2221_v58  ;;  %v5014_v33 = vpop.f32.mrb[69].mxu1 }
 0x2d1   :  { %v2224_v47 = vpop.f32.mrb[70].mxu1 }
 0x2d2   :  { %v7101_v8 = vadd.f32 %v2442_v20, %v2224_v47  ;;  %v5015_v60 = vpop.f32.mrb[71].mxu1 }
 0x2d4   :  { %5185 = vmatmul.mubr.msk.bf16.gmra.mrb[124].mxu1 %vm1880_vm5, %v6741_v13 }
 0x2d5   :  { %5188 = vmatprep.mubr.msk.bf16.mxu1 %vm6002_vm4, %v6001_v57 }
 0x2d7   :  { %v2229_v31 = vpop.f32.mrb[72].mxu1 }
 0x2d8   :  { %v7107_v27 = vadd.f32 %v2447_v55, %v2229_v31  ;;  %v5018_v6 = vpop.f32.mrb[73].mxu1 }
 0x2d9   :  { %v2232_v4 = vpop.f32.mrb[74].mxu1 }
 0x2da   :  { %v7109_v25 = vadd.f32 %v2450_v51, %v2232_v4  ;;  %v5019_v11 = vpop.f32.mrb[75].mxu1  ;;  %v7178_v51 = vld [vmem:[%s7557_s5] ss:$0 sm:$0xff] }
 0x2dc   :  { %5189 = vmatmul.mubr.msk.bf16.gmra.mrb[128].mxu1 %vm1880_vm5, %v6745_v16 }
 0x2dd   :  { %5196 = vmatprep.mubr.msk.bf16.mxu1 %vm6002_vm4, %v6001_v57 }
 0x2df   :  { %v2237_v20 = vpop.f32.mrb[76].mxu1 }
 0x2e0   :  { %v7115_v14 = vadd.f32 %v2455_v26, %v2237_v20  ;;  %v5022_v13 = vpop.f32.mrb[77].mxu1 }
 0x2e1   :  { %v2240_v56 = vpop.f32.mrb[78].mxu1 }
 0x2e2   :  { %v5023_v59 = vpop.f32.mrb[79].mxu1 }
 0x2e4   :  { %5197 = vmatmul.mubr.msk.bf16.vlgmr.msra.gmra.mrb[80].mxu1 %vm1880_vm5, %v6725_v9  ;;  %v5963_v9 = vld [vmem:[%s7558_s6 + $0x18] sm:$0xff]  }
 0x2e5   :  { %5200 = vmatprep.mubr.msk.bf16.mxu1 %vm6002_vm4, %v6001_v57  ;;  %5251 = vmatpush3.bf16.msra.mxu0 %v5963_v9 }
 0x2e6   :  { %5296 = vmatprep.subr.bf16.mxu0 %v6001_v57 }
 0x2ec   :  { %5201 = vmatmul.mubr.msk.bf16.gmra.mrb[84].mxu1 %vm1880_vm5, %v6749_v43 }
 0x2ed   :  { %5204 = vmatprep.mubr.msk.bf16.mxu1 %vm6002_vm4, %v6001_v57 }
 0x2f4   :  { %5205 = vmatmul.mubr.msk.bf16.gmra.mrb[88].mxu1 %vm1880_vm5, %v6765_v36 }
 0x2f5   :  { %5208 = vmatprep.mubr.msk.bf16.mxu1 %vm6002_vm4, %v6001_v57 }
 0x2fc   :  { %5209 = vmatmul.mubr.msk.bf16.gmra.mrb[92].mxu1 %vm1880_vm5, %v6781_v38 }
 0x2fd   :  { %5212 = vmatprep.mubr.msk.bf16.mxu1 %vm6002_vm4, %v6001_v57 }
 0x304   :  { %5213 = vmatmul.mubr.msk.bf16.gmra.mrb[96].mxu1 %vm1880_vm5, %v6797_v50 }
 0x305   :  { %5216 = vmatprep.mubr.msk.bf16.mxu1 %vm6002_vm4, %v6001_v57 }
 0x30c   :  { %5217 = vmatmul.mubr.msk.bf16.gmra.mrb[100].mxu1 %vm1880_vm5, %v6813_v40 }
 0x30d   :  { %5220 = vmatprep.mubr.msk.bf16.mxu1 %vm6002_vm4, %v6001_v57 }
 0x314   :  { %5221 = vmatmul.mubr.msk.bf16.gmra.mrb[104].mxu1 %vm1880_vm5, %v6829_v29 }
 0x315   :  { %5224 = vmatprep.mubr.msk.bf16.mxu1 %vm6002_vm4, %v6001_v57 }
 0x31c   :  { %5225 = vmatmul.mubr.msk.bf16.gmra.mrb[108].mxu1 %vm1880_vm5, %v6847_v62 }
 0x31d   :  { %5228 = vmatprep.mubr.msk.bf16.mxu1 %vm6002_vm4, %v6001_v57 }
 0x324   :  { %5229 = vmatmul.mubr.msk.bf16.gmra.mrb[112].mxu1 %vm1880_vm5, %v6863_v3 }
 0x325   :  { %5232 = vmatprep.mubr.msk.bf16.mxu1 %vm6002_vm4, %v6001_v57 }
 0x32c   :  { %5233 = vmatmul.mubr.msk.bf16.gmra.mrb[116].mxu1 %vm1880_vm5, %v6875_v7 }
 0x32d   :  { %5236 = vmatprep.mubr.msk.bf16.mxu1 %vm6002_vm4, %v6001_v57 }
 0x334   :  { %5237 = vmatmul.mubr.msk.bf16.gmra.mrb[120].mxu1 %vm1880_vm5, %v6894_v49 }
 0x335   :  { %5240 = vmatprep.mubr.msk.bf16.mxu1 %vm6002_vm4, %v6001_v57 }
 0x33c   :  { %5241 = vmatmul.mubr.msk.bf16.gmra.mrb[124].mxu1 %vm1880_vm5, %v6910_v15 }
 0x33d   :  { %5244 = vmatprep.mubr.msk.bf16.mxu1 %vm6002_vm4, %v6001_v57 }
 0x344   :  { %5245 = vmatmul.mubr.msk.bf16.gmra.mrb[128].mxu1 %vm1880_vm5, %v6904_v22 }
 0x3b7   :  { %v2843_v16 = vpop.f32.mrb[80].mxu1 }
 0x3b8   :  { %v2970_v43 = vmax.f32 %v6990_v18, %v2843_v16  ;;  %v5198_v36 = vpop.f32.mrb[81].mxu1 }
 0x3b9   :  { %v2846_v38 = vpop.f32.mrb[82].mxu1 }
 0x3ba   :  { %v2971_v50 = vmax.f32 %v6994_v46, %v2846_v38  ;;  %v5199_v40 = vpop.f32.mrb[83].mxu1  ;;  %v3021_v29 = vrot.slane %v2970_v43, 2 }
 0x3bc   :  { %v3022_v62 = vrot.slane %v2971_v50, 2 }
 0x3be   :  { %v3023_v3 = vsel %vm2248_vm6, %v3021_v29, %v3022_v62 }
 0x3bf   :  { %v3094_v7 = vmax.f32 %v2970_v43, %v3023_v3  ;;  %v2851_v49 = vpop.f32.mrb[84].mxu1 }
 0x3c0   :  { %v2972_v15 = vmax.f32 %v6998_v42, %v2851_v49  ;;  %v5202_v22 = vpop.f32.mrb[85].mxu1 }
 0x3c1   :  { %v2854_v55 = vpop.f32.mrb[86].mxu1  ;;  %v3125_v23 = vadd.f32 %v7178_v51, %v3094_v7 }
 0x3c2   :  { %v3024_v18 = vrot.slane %v2972_v15, 2  ;;  %v2973_v26 = vmax.f32 %v7002_v53, %v2854_v55  ;;  %v5203_v46 = vpop.f32.mrb[87].mxu1  ;;  %v5964_v55 = vld [vmem:[%s7558_s6] sm:$0xff]  }
 0x3c3   :  { %v3149_v58 = vmax.f32 %v3125_v23, 0.0 }
 0x3c4   :  { %v3025_v61 = vsel %vm2248_vm6, %v3022_v62, %v3024_v18  ;;  %v3026_v39 = vrot.slane %v2973_v26, 2 }
 0x3c5   :  { %v3095_v48 = vmax.f32 %v2971_v50, %v3025_v61 }
 0x3c6   :  { %v3027_v12 = vsel %vm2248_vm6, %v3024_v18, %v3026_v39 }
 0x3c7   :  { %v3126_v42 = vadd.f32 %v7178_v51, %v3095_v48  ;;  %v3096_v52 = vmax.f32 %v2972_v15, %v3027_v12  ;;  %v2859_v17 = vpop.f32.mrb[88].mxu1 }
 0x3c8   :  { %v2974_v54 = vmax.f32 %v7006_v10, %v2859_v17  ;;  %v5206_v5 = vpop.f32.mrb[89].mxu1 }
 0x3c9   :  { %v3150_v33 = vmax.f32 %v3126_v42, 0.0  ;;  %v2862_v47 = vpop.f32.mrb[90].mxu1  ;;  %v3127_v20 = vadd.f32 %v7178_v51, %v3096_v52  ;;  %v5965_v52 = vld [vmem:[%s7558_s6 + $0x8] sm:$0xff]  }
 0x3ca   :  { %v3028_v53 = vrot.slane %v2974_v54, 2  ;;  %v2975_v60 = vmax.f32 %v7010_v45, %v2862_v47  ;;  %v5207_v31 = vpop.f32.mrb[91].mxu1 }
 0x3cb   :  { %v7187_v6 = vpack.c.bf16 %v3150_v33, %v3149_v58  ;;  %v3151_v36 = vmax.f32 %v3127_v20, 0.0 }
 0x3cc   :  { %v3029_v4 = vsel %vm2248_vm6, %v3026_v39, %v3028_v53  ;;  %v3030_v11 = vrot.slane %v2975_v60, 2 }
 0x3cd   :  { %v3097_v13 = vmax.f32 %v2973_v26, %v3029_v4  ;;  %v3206_v22 = vrot.slane %v7187_v6, 2 }
 0x3ce   :  { %v3031_v56 = vsel %vm2248_vm6, %v3028_v53, %v3030_v11 }
 0x3cf   :  { %v3128_v10 = vadd.f32 %v7178_v51, %v3097_v13  ;;  %v3098_v59 = vmax.f32 %v2974_v54, %v3031_v56  ;;  %v2867_v9 = vpop.f32.mrb[92].mxu1 }
 0x3d0   :  { %v2976_v16 = vmax.f32 %v7014_v44, %v2867_v9  ;;  %v5210_v43 = vpop.f32.mrb[93].mxu1 }
 0x3d1   :  { %v3152_v45 = vmax.f32 %v3128_v10, 0.0  ;;  %v2870_v38 = vpop.f32.mrb[94].mxu1  ;;  %v3129_v49 = vadd.f32 %v7178_v51, %v3098_v59 }
 0x3d2   :  { %v3032_v50 = vrot.slane %v2976_v16, 2  ;;  %v2977_v40 = vmax.f32 %v7018_v32, %v2870_v38  ;;  %v5211_v29 = vpop.f32.mrb[95].mxu1 }
 0x3d3   :  { %v7195_v62 = vpack.c.bf16 %v3152_v45, %v3151_v36  ;;  %v3153_v48 = vmax.f32 %v3129_v49, 0.0 }
 0x3d4   :  { %v3033_v3 = vsel %vm2248_vm6, %v3030_v11, %v3032_v50  ;;  %v3034_v7 = vrot.slane %v2977_v40, 2 }
 0x3d5   :  { %v3099_v15 = vmax.f32 %v2975_v60, %v3033_v3  ;;  %v3207_v44 = vrot.slane %v7195_v62, 2 }
 0x3d6   :  { %v3035_v18 = vsel %vm2248_vm6, %v3032_v50, %v3034_v7 }
 0x3d7   :  { %v3130_v32 = vadd.f32 %v7178_v51, %v3099_v15  ;;  %v3100_v26 = vmax.f32 %v2976_v16, %v3035_v18  ;;  %v2875_v46 = vpop.f32.mrb[96].mxu1  ;;  %v3208_v61 = vsel %vm2248_vm6, %v3206_v22, %v3207_v44 }
 0x3d8   :  { %v2978_v39 = vmax.f32 %v7025_v19, %v2875_v46  ;;  %v5214_v23 = vpop.f32.mrb[97].mxu1  ;;  %5253 = vmatmul.mubr.msk.bf16.vlgmr.msra.gmra.mrb[80].mxu0 %vm1880_vm5, %v3208_v61 }
 0x3d9   :  { %v3154_v12 = vmax.f32 %v3130_v32, 0.0  ;;  %v2878_v42 = vpop.f32.mrb[98].mxu1  ;;  %5256 = vmatprep.mubr.msk.bf16.mxu0 %vm6002_vm4, %v6001_v57  ;;  %5297 = vmatpush3.bf16.msra.mxu0 %v5964_v55  ;;  %v3131_v47 = vadd.f32 %v7178_v51, %v3100_v26 }
 0x3da   :  { %v3036_v17 = vrot.slane %v2978_v39, 2  ;;  %v2979_v54 = vmax.f32 %v7033_v35, %v2878_v42  ;;  %v5215_v5 = vpop.f32.mrb[99].mxu1  ;;  %5298 = vmatprep.subr.bf16.mxu0 %v6001_v57 }
 0x3db   :  { %v7216_v19 = vpack.c.bf16 %v3154_v12, %v3153_v48  ;;  %v3155_v10 = vmax.f32 %v3131_v47, 0.0 }
 0x3dc   :  { %v3037_v58 = vsel %vm2248_vm6, %v3034_v7, %v3036_v17  ;;  %v3038_v33 = vrot.slane %v2979_v54, 2 }
 0x3dd   :  { %v3101_v53 = vmax.f32 %v2977_v40, %v3037_v58  ;;  %v3209_v60 = vrot.slane %v7216_v19, 2  ;;  %5299 = vmatpush3.bf16.msra.mxu0 %v5965_v52 }
 0x3de   :  { %v3039_v31 = vsel %vm2248_vm6, %v3036_v17, %v3038_v33  ;;  %5344 = vmatprep.subr.bf16.mxu0 %v6001_v57 }
 0x3df   :  { %v3132_v35 = vadd.f32 %v7178_v51, %v3101_v53  ;;  %v3102_v4 = vmax.f32 %v2978_v39, %v3039_v31  ;;  %v2883_v11 = vpop.f32.mrb[100].mxu1  ;;  %v3210_v20 = vsel %vm2248_vm6, %v3207_v44, %v3209_v60 }
 0x3e0   :  { %v2980_v13 = vmax.f32 %v7055_v30, %v2883_v11  ;;  %v5218_v56 = vpop.f32.mrb[101].mxu1  ;;  %5257 = vmatmul.mubr.msk.bf16.gmra.mrb[84].mxu0 %vm1880_vm5, %v3210_v20 }
 0x3e1   :  { %v3156_v59 = vmax.f32 %v3132_v35, 0.0  ;;  %v2886_v9 = vpop.f32.mrb[102].mxu1  ;;  %5260 = vmatprep.mubr.msk.bf16.mxu0 %vm6002_vm4, %v6001_v57  ;;  %v3133_v30 = vadd.f32 %v7178_v51, %v3102_v4 }
 0x3e2   :  { %v3040_v16 = vrot.slane %v2980_v13, 2  ;;  %v2981_v43 = vmax.f32 %v7057_v63, %v2886_v9  ;;  %v5219_v36 = vpop.f32.mrb[103].mxu1 }
 0x3e3   :  { %v7230_v45 = vpack.c.bf16 %v3156_v59, %v3155_v10  ;;  %v3157_v55 = vmax.f32 %v3133_v30, 0.0 }
 0x3e4   :  { %v3041_v38 = vsel %vm2248_vm6, %v3038_v33, %v3040_v16  ;;  %v3042_v50 = vrot.slane %v2981_v43, 2 }
 0x3e5   :  { %v3103_v40 = vmax.f32 %v2979_v54, %v3041_v38  ;;  %v3211_v29 = vrot.slane %v7230_v45, 2 }
 0x3e6   :  { %v3043_v3 = vsel %vm2248_vm6, %v3040_v16, %v3042_v50 }
 0x3e7   :  { %v3134_v7 = vadd.f32 %v7178_v51, %v3103_v40  ;;  %v3104_v49 = vmax.f32 %v2980_v13, %v3043_v3  ;;  %v2891_v15 = vpop.f32.mrb[104].mxu1  ;;  %v3212_v22 = vsel %vm2248_vm6, %v3209_v60, %v3211_v29 }
 0x3e8   :  { %v2982_v63 = vmax.f32 %v7063_v41, %v2891_v15  ;;  %v5222_v44 = vpop.f32.mrb[105].mxu1  ;;  %5261 = vmatmul.mubr.msk.bf16.gmra.mrb[88].mxu0 %vm1880_vm5, %v3212_v22 }
 0x3e9   :  { %v3158_v18 = vmax.f32 %v3134_v7, 0.0  ;;  %v2894_v32 = vpop.f32.mrb[106].mxu1  ;;  %5264 = vmatprep.mubr.msk.bf16.mxu0 %vm6002_vm4, %v6001_v57  ;;  %v3135_v41 = vadd.f32 %v7178_v51, %v3104_v49 }
 0x3ea   :  { %v3044_v26 = vrot.slane %v2982_v63, 2  ;;  %v2983_v46 = vmax.f32 %v7065_v37, %v2894_v32  ;;  %v5223_v61 = vpop.f32.mrb[107].mxu1 }
 0x3eb   :  { %v7243_v39 = vpack.c.bf16 %v3158_v18, %v3157_v55  ;;  %v3159_v47 = vmax.f32 %v3135_v41, 0.0 }
 0x3ec   :  { %v3045_v23 = vsel %vm2248_vm6, %v3042_v50, %v3044_v26  ;;  %v3046_v48 = vrot.slane %v2983_v46, 2 }
 0x3ed   :  { %v3105_v12 = vmax.f32 %v2981_v43, %v3045_v23  ;;  %v3213_v42 = vrot.slane %v7243_v39, 2 }
 0x3ee   :  { %v3047_v52 = vsel %vm2248_vm6, %v3044_v26, %v3046_v48 }
 0x3ef   :  { %v3136_v17 = vadd.f32 %v7178_v51, %v3105_v12  ;;  %v3106_v54 = vmax.f32 %v2982_v63, %v3047_v52  ;;  %v2899_v5 = vpop.f32.mrb[108].mxu1  ;;  %v3214_v58 = vsel %vm2248_vm6, %v3211_v29, %v3213_v42 }
 0x3f0   :  { %v2984_v37 = vmax.f32 %v7071_v0, %v2899_v5  ;;  %v5226_v33 = vpop.f32.mrb[109].mxu1  ;;  %5265 = vmatmul.mubr.msk.bf16.gmra.mrb[92].mxu0 %vm1880_vm5, %v3214_v58 }
 0x3f1   :  { %v3160_v53 = vmax.f32 %v3136_v17, 0.0  ;;  %v2902_v60 = vpop.f32.mrb[110].mxu1  ;;  %5268 = vmatprep.mubr.msk.bf16.mxu0 %vm6002_vm4, %v6001_v57  ;;  %v3137_v0 = vadd.f32 %v7178_v51, %v3106_v54 }
 0x3f2   :  { %v3048_v31 = vrot.slane %v2984_v37, 2  ;;  %v2985_v35 = vmax.f32 %v7073_v21, %v2902_v60  ;;  %v5227_v4 = vpop.f32.mrb[111].mxu1 }
 0x3f3   :  { %v7256_v11 = vpack.c.bf16 %v3160_v53, %v3159_v47  ;;  %v3161_v50 = vmax.f32 %v3137_v0, 0.0 }
 0x3f4   :  { %v3049_v20 = vsel %vm2248_vm6, %v3046_v48, %v3048_v31  ;;  %v3050_v13 = vrot.slane %v2985_v35, 2 }
 0x3f5   :  { %v3107_v56 = vmax.f32 %v2983_v46, %v3049_v20  ;;  %v3215_v10 = vrot.slane %v7256_v11, 2 }
 0x3f6   :  { %v3051_v59 = vsel %vm2248_vm6, %v3048_v31, %v3050_v13 }
 0x3f7   :  { %v3138_v9 = vadd.f32 %v7178_v51, %v3107_v56  ;;  %v3108_v16 = vmax.f32 %v2984_v37, %v3051_v59  ;;  %v2907_v43 = vpop.f32.mrb[112].mxu1  ;;  %v3216_v36 = vsel %vm2248_vm6, %v3213_v42, %v3215_v10 }
 0x3f8   :  { %v2986_v21 = vmax.f32 %v7079_v1, %v2907_v43  ;;  %v5230_v38 = vpop.f32.mrb[113].mxu1  ;;  %5269 = vmatmul.mubr.msk.bf16.gmra.mrb[96].mxu0 %vm1880_vm5, %v3216_v36 }
 0x3f9   :  { %v3162_v30 = vmax.f32 %v3138_v9, 0.0  ;;  %v2910_v40 = vpop.f32.mrb[114].mxu1  ;;  %5272 = vmatprep.mubr.msk.bf16.mxu0 %vm6002_vm4, %v6001_v57  ;;  %v3139_v1 = vadd.f32 %v7178_v51, %v3108_v16 }
 0x3fa   :  { %v3052_v29 = vrot.slane %v2986_v21, 2  ;;  %v2987_v3 = vmax.f32 %v7081_v28, %v2910_v40  ;;  %v5231_v7 = vpop.f32.mrb[115].mxu1 }
 0x3fb   :  { %v7269_v49 = vpack.c.bf16 %v3162_v30, %v3161_v50  ;;  %v3163_v23 = vmax.f32 %v3139_v1, 0.0 }
 0x3fc   :  { %v3053_v15 = vsel %vm2248_vm6, %v3050_v13, %v3052_v29  ;;  %v3054_v22 = vrot.slane %v2987_v3, 2 }
 0x3fd   :  { %v3109_v63 = vmax.f32 %v2985_v35, %v3053_v15  ;;  %v3217_v44 = vrot.slane %v7269_v49, 2 }
 0x3fe   :  { %v3055_v55 = vsel %vm2248_vm6, %v3052_v29, %v3054_v22 }
 0x3ff   :  { %v3140_v18 = vadd.f32 %v7178_v51, %v3109_v63  ;;  %v3110_v32 = vmax.f32 %v2986_v21, %v3055_v55  ;;  %v2915_v26 = vpop.f32.mrb[116].mxu1  ;;  %v3218_v46 = vsel %vm2248_vm6, %v3215_v10, %v3217_v44 }
 0x400   :  { %v2988_v28 = vmax.f32 %v7091_v2, %v2915_v26  ;;  %v5234_v61 = vpop.f32.mrb[117].mxu1  ;;  %5273 = vmatmul.mubr.msk.bf16.gmra.mrb[100].mxu0 %vm1880_vm5, %v3218_v46 }
 0x401   :  { %v3164_v48 = vmax.f32 %v3140_v18, 0.0  ;;  %v2918_v41 = vpop.f32.mrb[118].mxu1  ;;  %5276 = vmatprep.mubr.msk.bf16.mxu0 %vm6002_vm4, %v6001_v57  ;;  %v3141_v2 = vadd.f32 %v7178_v51, %v3110_v32 }
 0x402   :  { %v3056_v12 = vrot.slane %v2988_v28, 2  ;;  %v2989_v42 = vmax.f32 %v7093_v34, %v2918_v41  ;;  %v5235_v52 = vpop.f32.mrb[119].mxu1 }
 0x403   :  { %v7282_v17 = vpack.c.bf16 %v3164_v48, %v3163_v23  ;;  %v3165_v4 = vmax.f32 %v3141_v2, 0.0 }
 0x404   :  { %v3057_v54 = vsel %vm2248_vm6, %v3054_v22, %v3056_v12  ;;  %v3058_v5 = vrot.slane %v2989_v42, 2 }
 0x405   :  { %v3111_v58 = vmax.f32 %v2987_v3, %v3057_v54  ;;  %v3219_v37 = vrot.slane %v7282_v17, 2 }
 0x406   :  { %v3059_v33 = vsel %vm2248_vm6, %v3056_v12, %v3058_v5 }
 0x407   :  { %v3142_v47 = vadd.f32 %v7178_v51, %v3111_v58  ;;  %v3112_v53 = vmax.f32 %v2988_v28, %v3059_v33  ;;  %v2923_v60 = vpop.f32.mrb[120].mxu1  ;;  %v3220_v31 = vsel %vm2248_vm6, %v3217_v44, %v3219_v37 }
 0x408   :  { %v2990_v34 = vmax.f32 %v7099_v24, %v2923_v60  ;;  %v5238_v35 = vpop.f32.mrb[121].mxu1  ;;  %5277 = vmatmul.mubr.msk.bf16.gmra.mrb[104].mxu0 %vm1880_vm5, %v3220_v31 }
 0x409   :  { %v3166_v20 = vmax.f32 %v3142_v47, 0.0  ;;  %v2926_v13 = vpop.f32.mrb[122].mxu1  ;;  %5280 = vmatprep.mubr.msk.bf16.mxu0 %vm6002_vm4, %v6001_v57  ;;  %v3143_v24 = vadd.f32 %v7178_v51, %v3112_v53 }
 0x40a   :  { %v3060_v0 = vrot.slane %v2990_v34, 2  ;;  %v2991_v56 = vmax.f32 %v7101_v8, %v2926_v13  ;;  %v5239_v10 = vpop.f32.mrb[123].mxu1  ;;  %v3568_v13 = vrot.slane %v7195_v62, 4 }
 0x40b   :  { %v7295_v59 = vpack.c.bf16 %v3166_v20, %v3165_v4  ;;  %v3167_v3 = vmax.f32 %v3143_v24, 0.0  ;;  %v5967_v20 = vld [vmem:[%s7558_s6 + $0x28] sm:$0xff]  }
 0x40c   :  { %v3061_v9 = vsel %vm2248_vm6, %v3058_v5, %v3060_v0  ;;  %v3062_v16 = vrot.slane %v2991_v56, 2 }
 0x40d   :  { %v3113_v43 = vmax.f32 %v2989_v42, %v3061_v9  ;;  %v3221_v36 = vrot.slane %v7295_v59, 2  ;;  %v5969_v9 = vld [vmem:[%s7558_s6 + $0x38] sm:$0xff]  }
 0x40e   :  { %v3063_v21 = vsel %vm2248_vm6, %v3060_v0, %v3062_v16  ;;  %v3567_v0 = vrot.slane %v7187_v6, 4 }
 0x40f   :  { %v3144_v38 = vadd.f32 %v7178_v51, %v3113_v43  ;;  %v3114_v50 = vmax.f32 %v2990_v34, %v3063_v21  ;;  %v2931_v30 = vpop.f32.mrb[124].mxu1  ;;  %v3222_v40 = vsel %vm2248_vm6, %v3219_v37, %v3221_v36  ;;  %v3572_v43 = vrot.slane %v7230_v45, 4 }
 0x410   :  { %v2992_v8 = vmax.f32 %v7107_v27, %v2931_v30  ;;  %v5242_v29 = vpop.f32.mrb[125].mxu1  ;;  %5281 = vmatmul.mubr.msk.bf16.gmra.mrb[108].mxu0 %vm1880_vm5, %v3222_v40  ;;  %v3569_v10 = vsel %vm309_vm0, %v3567_v0, %v3568_v13  ;;  %v3574_v21 = vrot.slane %v7243_v39, 4  ;;  %v3578_v40 = vrot.slane %v7269_v49, 4 }
 0x411   :  { %v3168_v7 = vmax.f32 %v3144_v38, 0.0  ;;  %v2934_v15 = vpop.f32.mrb[126].mxu1  ;;  %5284 = vmatprep.mubr.msk.bf16.mxu0 %vm6002_vm4, %v6001_v57  ;;  %v3145_v27 = vadd.f32 %v7178_v51, %v3114_v50  ;;  %v3576_v50 = vrot.slane %v7256_v11, 4  ;;  %v3580_v29 = vrot.slane %v7282_v17, 4 }
 0x412   :  { %v3064_v22 = vrot.slane %v2992_v8, 2  ;;  %v2993_v1 = vmax.f32 %v7109_v25, %v2934_v15  ;;  %v5243_v63 = vpop.f32.mrb[127].mxu1  ;;  %v3575_v38 = vsel %vm309_vm0, %v3572_v43, %v3574_v21 }
 0x413   :  { %v7308_v44 = vpack.c.bf16 %v3168_v7, %v3167_v3  ;;  %v3169_v12 = vmax.f32 %v3145_v27, 0.0  ;;  %v3577_v30 = vsel %vm309_vm0, %v3574_v21, %v3576_v50  ;;  %v3581_v3 = vsel %vm309_vm0, %v3578_v40, %v3580_v29 }
 0x414   :  { %v3065_v55 = vsel %vm2248_vm6, %v3062_v16, %v3064_v22  ;;  %v3066_v18 = vrot.slane %v2993_v1, 2  ;;  %v3570_v16 = vrot.slane %v7216_v19, 4  ;;  %v3582_v7 = vrot.slane %v7295_v59, 4 }
 0x415   :  { %v3115_v32 = vmax.f32 %v2991_v56, %v3065_v55  ;;  %v3223_v26 = vrot.slane %v7308_v44, 2  ;;  %v5968_v56 = vld [vmem:[%s7558_s6 + $0x30] sm:$0xff]  }
 0x416   :  { %v3067_v46 = vsel %vm2248_vm6, %v3064_v22, %v3066_v18  ;;  %v3571_v24 = vsel %vm309_vm0, %v3568_v13, %v3570_v16  ;;  %v3583_v15 = vsel %vm309_vm0, %v3580_v29, %v3582_v7  ;;  %v3584_v22 = vrot.slane %v7308_v44, 4 }
 0x417   :  { %v3146_v28 = vadd.f32 %v7178_v51, %v3115_v32  ;;  %v3116_v61 = vmax.f32 %v2992_v8, %v3067_v46  ;;  %v2939_v23 = vpop.f32.mrb[128].mxu1  ;;  %v3224_v48 = vsel %vm2248_vm6, %v3221_v36, %v3223_v26  ;;  %v3573_v36 = vsel %vm309_vm0, %v3570_v16, %v3572_v43 }
 0x418   :  { %v2994_v25 = vmax.f32 %v7115_v14, %v2939_v23  ;;  %v5246_v41 = vpop.f32.mrb[129].mxu1  ;;  %5285 = vmatmul.mubr.msk.bf16.gmra.mrb[112].mxu0 %vm1880_vm5, %v3224_v48  ;;  %v3579_v8 = vsel %vm309_vm0, %v3576_v50, %v3578_v40  ;;  %v3785_v32 = vrot.slane %v7195_v62, 6  ;;  %v3791_v23 = vrot.slane %v7243_v39, 6 }
 0x419   :  { %v3170_v42 = vmax.f32 %v3146_v28, 0.0  ;;  %v2942_v52 = vpop.f32.mrb[130].mxu1  ;;  %5288 = vmatprep.mubr.msk.bf16.mxu0 %vm6002_vm4, %v6001_v57  ;;  %v3147_v37 = vadd.f32 %v7178_v51, %v3116_v61  ;;  %v3787_v28 = vrot.slane %v7216_v19, 6  ;;  %v3793_v48 = vrot.slane %v7256_v11, 6 }
 0x41a   :  { %v3068_v54 = vrot.slane %v2994_v25, 2  ;;  %v5247_v5 = vpop.f32.mrb[131].mxu1  ;;  %v3795_v25 = vrot.slane %v7269_v49, 6  ;;  %v3797_v41 = vrot.slane %v7282_v17, 6 }
 0x41b   :  { %v7320_v2 = vpack.c.bf16 %v3170_v42, %v3169_v12  ;;  %v3171_v60 = vmax.f32 %v3147_v37, 0.0  ;;  %v3788_v61 = vsel %vm3783_vm7, %v3785_v32, %v3787_v28  ;;  %v3799_v12 = vrot.slane %v7295_v59, 6 }
 0x41c   :  { %v3069_v58 = vsel %vm2248_vm6, %v3066_v18, %v3068_v54  ;;  %v3801_v42 = vrot.slane %v7308_v44, 6  ;;  %v6003_v5 = vmov 0.0|0.0  }
 0x41d   :  { %v3117_v33 = vmax.f32 %v2993_v1, %v3069_v58  ;;  %v3225_v14 = vrot.slane %v7320_v2, 2  ;;  %v3585_v1 = vsel %vm309_vm0, %v3582_v7, %v3584_v22  ;;  %v3586_v63 = vrot.slane %v7320_v2, 4  ;;  %5448 = vmatprep.subr.bf16.mxu1 %v6003_v5 }
 0x41e   :  { %v3803_v52 = vrot.slane %v7320_v2, 6 }
 0x41f   :  { %v3148_v47 = vadd.f32 %v7178_v51, %v3117_v33  ;;  %v3226_v53 = vsel %vm2248_vm6, %v3223_v26, %v3225_v14  ;;  %v5966_v51 = vld [vmem:[%s7558_s6 + $0x20] sm:$0xff]   ;;  %v3587_v55 = vsel %vm309_vm0, %v3584_v22, %v3586_v63  ;;  %v3784_v26 = vrot.slane %v7187_v6, 6 }
 0x420   :  { %5289 = vmatmul.mubr.msk.bf16.gmra.mrb[116].mxu0 %vm1880_vm5, %v3226_v53 }
 0x421   :  { %v3172_v31 = vmax.f32 %v3148_v47, 0.0  ;;  %5292 = vmatprep.mubr.msk.bf16.mxu0 %vm6002_vm4, %v6001_v57  ;;  %v3786_v46 = vsel %vm3783_vm7, %v3784_v26, %v3785_v32 }
 0x423   :  { %v7330_v34 = vpack.c.bf16 %v3172_v31, %v3171_v60 }
 0x425   :  { %v3227_v35 = vrot.slane %v7330_v34, 2  ;;  %v3588_v18 = vrot.slane %v7330_v34, 4  ;;  %v3805_v54 = vrot.slane %v7330_v34, 6 }
 0x427   :  { %v3228_v4 = vsel %vm2248_vm6, %v3225_v14, %v3227_v35  ;;  %v3589_v27 = vsel %vm309_vm0, %v3586_v63, %v3588_v18 }
 0x428   :  { %5293 = vmatmul.mubr.msk.bf16.gmra.mrb[120].mxu0 %vm1880_vm5, %v3228_v4 }
 0x429   :  { %5300 = vmatprep.mubr.msk.bf16.mxu0 %vm6002_vm4, %v6001_v57 }
 0x430   :  { %5301 = vmatmul.mubr.msk.bf16.vlgmr.msra.gmra.mrb[80].mxu0 %vm1880_vm5, %v7187_v6 }
 0x431   :  { %5304 = vmatprep.mubr.msk.bf16.mxu0 %vm6002_vm4, %v6001_v57  ;;  %5345 = vmatpush3.bf16.msra.mxu0 %v5966_v51 }
 0x432   :  { %5346 = vmatprep.subr.bf16.mxu0 %v6001_v57 }
 0x435   :  { %5347 = vmatpush3.bf16.msra.mxu0 %v5967_v20 }
 0x436   :  { %5392 = vmatprep.subr.bf16.mxu0 %v6001_v57 }
 0x438   :  { %5305 = vmatmul.mubr.msk.bf16.gmra.mrb[84].mxu0 %vm1880_vm5, %v7195_v62  ;;  %v3789_v62 = vrot.slane %v7230_v45, 6 }
 0x439   :  { %5308 = vmatprep.mubr.msk.bf16.mxu0 %vm6002_vm4, %v6001_v57 }
 0x43a   :  { %v3790_v6 = vsel %vm3783_vm7, %v3787_v28, %v3789_v62 }
 0x440   :  { %5309 = vmatmul.mubr.msk.bf16.gmra.mrb[88].mxu0 %vm1880_vm5, %v7216_v19  ;;  %v3792_v19 = vsel %vm3783_vm7, %v3789_v62, %v3791_v23 }
 0x441   :  { %5312 = vmatprep.mubr.msk.bf16.mxu0 %vm6002_vm4, %v6001_v57 }
 0x448   :  { %5313 = vmatmul.mubr.msk.bf16.gmra.mrb[92].mxu0 %vm1880_vm5, %v7230_v45  ;;  %v3794_v45 = vsel %vm3783_vm7, %v3791_v23, %v3793_v48 }
 0x449   :  { %5316 = vmatprep.mubr.msk.bf16.mxu0 %vm6002_vm4, %v6001_v57 }
 0x450   :  { %5317 = vmatmul.mubr.msk.bf16.gmra.mrb[96].mxu0 %vm1880_vm5, %v7243_v39  ;;  %v3796_v39 = vsel %vm3783_vm7, %v3793_v48, %v3795_v25 }
 0x451   :  { %5320 = vmatprep.mubr.msk.bf16.mxu0 %vm6002_vm4, %v6001_v57 }
 0x458   :  { %5321 = vmatmul.mubr.msk.bf16.gmra.mrb[100].mxu0 %vm1880_vm5, %v7256_v11  ;;  %v3798_v11 = vsel %vm3783_vm7, %v3795_v25, %v3797_v41 }
 0x459   :  { %5324 = vmatprep.mubr.msk.bf16.mxu0 %vm6002_vm4, %v6001_v57 }
 0x460   :  { %5325 = vmatmul.mubr.msk.bf16.gmra.mrb[104].mxu0 %vm1880_vm5, %v7269_v49  ;;  %v3800_v49 = vsel %vm3783_vm7, %v3797_v41, %v3799_v12 }
 0x461   :  { %5328 = vmatprep.mubr.msk.bf16.mxu0 %vm6002_vm4, %v6001_v57 }
 0x468   :  { %5329 = vmatmul.mubr.msk.bf16.gmra.mrb[108].mxu0 %vm1880_vm5, %v7282_v17  ;;  %v3802_v17 = vsel %vm3783_vm7, %v3799_v12, %v3801_v42 }
 0x469   :  { %5332 = vmatprep.mubr.msk.bf16.mxu0 %vm6002_vm4, %v6001_v57 }
 0x470   :  { %5333 = vmatmul.mubr.msk.bf16.gmra.mrb[112].mxu0 %vm1880_vm5, %v7295_v59  ;;  %v3804_v59 = vsel %vm3783_vm7, %v3801_v42, %v3803_v52  ;;  %v3995_v42 = vld [vmem:[%s7560_s8] sm:$0xff] }
 0x471   :  { %5336 = vmatprep.mubr.msk.bf16.mxu0 %vm6002_vm4, %v6001_v57 }
 0x478   :  { %5337 = vmatmul.mubr.msk.bf16.gmra.mrb[116].mxu0 %vm1880_vm5, %v7308_v44  ;;  %v3806_v44 = vsel %vm3783_vm7, %v3803_v52, %v3805_v54  ;;  %v5971_v52 = vld [vmem:[%s7561_s9 + $0x8] sm:$0xff]  }
 0x479   :  { %5340 = vmatprep.mubr.msk.bf16.mxu0 %vm6002_vm4, %v6001_v57 }
 0x480   :  { %5341 = vmatmul.mubr.msk.bf16.gmra.mrb[120].mxu0 %vm1880_vm5, %v7320_v2  ;;  %v3996_v2 = vld [vmem:[%s7560_s8 + $0x8] sm:$0xff] }
 0x481   :  { %5348 = vmatprep.mubr.msk.bf16.mxu0 %vm6002_vm4, %v6001_v57  ;;  %4474 = vmatprep.mubr.msk.f32.mxu1 %vm4004_vm8, %v3996_v2 }
 0x488   :  { %5349 = vmatmul.mubr.msk.bf16.vlgmr.msra.gmra.mrb[80].mxu0 %vm1880_vm5, %v3569_v10 }
 0x489   :  { %5352 = vmatprep.mubr.msk.bf16.mxu0 %vm6002_vm4, %v6001_v57  ;;  %5393 = vmatpush3.bf16.msra.mxu0 %v5968_v56 }
 0x48a   :  { %5394 = vmatprep.subr.bf16.mxu0 %v6001_v57 }
 0x48d   :  { %5395 = vmatpush3.bf16.msra.mxu0 %v5969_v9 }
 0x490   :  { %5353 = vmatmul.mubr.msk.bf16.gmra.mrb[84].mxu0 %vm1880_vm5, %v3571_v24 }
 0x491   :  { %5356 = vmatprep.mubr.msk.bf16.mxu0 %vm6002_vm4, %v6001_v57 }
 0x498   :  { %5357 = vmatmul.mubr.msk.bf16.gmra.mrb[88].mxu0 %vm1880_vm5, %v3573_v36 }
 0x499   :  { %5360 = vmatprep.mubr.msk.bf16.mxu0 %vm6002_vm4, %v6001_v57 }
 0x4a0   :  { %5361 = vmatmul.mubr.msk.bf16.gmra.mrb[92].mxu0 %vm1880_vm5, %v3575_v38 }
 0x4a1   :  { %5364 = vmatprep.mubr.msk.bf16.mxu0 %vm6002_vm4, %v6001_v57 }
 0x4a8   :  { %5365 = vmatmul.mubr.msk.bf16.gmra.mrb[96].mxu0 %vm1880_vm5, %v3577_v30 }
 0x4a9   :  { %5368 = vmatprep.mubr.msk.bf16.mxu0 %vm6002_vm4, %v6001_v57 }
 0x4b0   :  { %5369 = vmatmul.mubr.msk.bf16.gmra.mrb[100].mxu0 %vm1880_vm5, %v3579_v8 }
 0x4b1   :  { %5372 = vmatprep.mubr.msk.bf16.mxu0 %vm6002_vm4, %v6001_v57 }
 0x4b8   :  { %5373 = vmatmul.mubr.msk.bf16.gmra.mrb[104].mxu0 %vm1880_vm5, %v3581_v3 }
 0x4b9   :  { %5376 = vmatprep.mubr.msk.bf16.mxu0 %vm6002_vm4, %v6001_v57 }
 0x4c0   :  { %5377 = vmatmul.mubr.msk.bf16.gmra.mrb[108].mxu0 %vm1880_vm5, %v3583_v15 }
 0x4c1   :  { %5380 = vmatprep.mubr.msk.bf16.mxu0 %vm6002_vm4, %v6001_v57 }
 0x4c8   :  { %5381 = vmatmul.mubr.msk.bf16.gmra.mrb[112].mxu0 %vm1880_vm5, %v3585_v1 }
 0x4c9   :  { %5384 = vmatprep.mubr.msk.bf16.mxu0 %vm6002_vm4, %v6001_v57 }
 0x4d0   :  { %5385 = vmatmul.mubr.msk.bf16.gmra.mrb[116].mxu0 %vm1880_vm5, %v3587_v55 }
 0x4d1   :  { %5388 = vmatprep.mubr.msk.bf16.mxu0 %vm6002_vm4, %v6001_v57 }
 0x4d8   :  { %5389 = vmatmul.mubr.msk.bf16.gmra.mrb[120].mxu0 %vm1880_vm5, %v3589_v27 }
 0x4d9   :  { %5396 = vmatprep.mubr.msk.bf16.mxu0 %vm6002_vm4, %v6001_v57 }
 0x4e0   :  { %5397 = vmatmul.mubr.msk.bf16.vlgmr.msra.gmra.mrb[80].mxu0 %vm1880_vm5, %v3786_v46 }
 0x4e1   :  { %5400 = vmatprep.mubr.msk.bf16.mxu0 %vm6002_vm4, %v6001_v57 }
 0x4e8   :  { %5401 = vmatmul.mubr.msk.bf16.gmra.mrb[84].mxu0 %vm1880_vm5, %v3788_v61 }
 0x4e9   :  { %5404 = vmatprep.mubr.msk.bf16.mxu0 %vm6002_vm4, %v6001_v57 }
 0x4f0   :  { %5405 = vmatmul.mubr.msk.bf16.gmra.mrb[88].mxu0 %vm1880_vm5, %v3790_v6 }
 0x4f1   :  { %5408 = vmatprep.mubr.msk.bf16.mxu0 %vm6002_vm4, %v6001_v57 }
 0x4f8   :  { %5409 = vmatmul.mubr.msk.bf16.gmra.mrb[92].mxu0 %vm1880_vm5, %v3792_v19 }
 0x4f9   :  { %5412 = vmatprep.mubr.msk.bf16.mxu0 %vm6002_vm4, %v6001_v57 }
 0x500   :  { %5413 = vmatmul.mubr.msk.bf16.gmra.mrb[96].mxu0 %vm1880_vm5, %v3794_v45 }
 0x501   :  { %5416 = vmatprep.mubr.msk.bf16.mxu0 %vm6002_vm4, %v6001_v57 }
 0x508   :  { %5417 = vmatmul.mubr.msk.bf16.gmra.mrb[100].mxu0 %vm1880_vm5, %v3796_v39 }
 0x509   :  { %5420 = vmatprep.mubr.msk.bf16.mxu0 %vm6002_vm4, %v6001_v57 }
 0x510   :  { %5421 = vmatmul.mubr.msk.bf16.gmra.mrb[104].mxu0 %vm1880_vm5, %v3798_v11 }
 0x511   :  { %5424 = vmatprep.mubr.msk.bf16.mxu0 %vm6002_vm4, %v6001_v57 }
 0x518   :  { %5425 = vmatmul.mubr.msk.bf16.gmra.mrb[108].mxu0 %vm1880_vm5, %v3800_v49 }
 0x519   :  { %5428 = vmatprep.mubr.msk.bf16.mxu0 %vm6002_vm4, %v6001_v57 }
 0x520   :  { %5429 = vmatmul.mubr.msk.bf16.gmra.mrb[112].mxu0 %vm1880_vm5, %v3802_v17  ;;  %v5970_v17 = vld [vmem:[%s7561_s9] sm:$0xff]  }
 0x521   :  { %5432 = vmatprep.mubr.msk.bf16.mxu0 %vm6002_vm4, %v6001_v57 }
 0x528   :  { %5433 = vmatmul.mubr.msk.bf16.gmra.mrb[116].mxu0 %vm1880_vm5, %v3804_v59  ;;  %v4473_v59 = vld [vmem:[%s7559_s7] ss:$0 sm:$0xff]  ;;  %s6004_s7 = smov [#allocation2]  }
 0x529   :  { %5436 = vmatprep.mubr.msk.bf16.mxu0 %vm6002_vm4, %v6001_v57  ;;  %s4163_s9 = sshll.u32 %s6004_s7, 4  ;;  %s4164_s9 = int_to_ptr.vmem [resolvable:$true] %s4163_s9 }
 0x52a   :  { %p5981_p1 = scmp.lt.s32.totalorder %s4164_s9, %s4164_s9 }
 0x530   :  { %5437 = vmatmul.mubr.msk.bf16.gmra.mrb[120].mxu0 %vm1880_vm5, %v3806_v44 }
 0x5b3   :  { %v3886_v58 = vpop.f32.mrb[80].mxu0 }
 0x5b4   :  { %v5398_v37 = vpop.f32.mrb[81].mxu0 }
 0x5b5   :  { %v3889_v33 = vpop.f32.mrb[82].mxu0  ;;  %v4475_v37 = vld [vmem:[%s7562_s10] ss:$0 sm:$0xff]  ;;  %s5976_s10 = scalar_lea.vmem %s4164_s9, 128 }
 0x5b6   :  { %v5449_v14 = vpack.c.bf16 %v3889_v33, %v3886_v58  ;;  %v5399_v47 = vpop.f32.mrb[83].mxu0  ;;  %p5977_p0 = scmp.ne.s32.totalorder %s4164_s9, %s5976_s10  ;;  %p5982_p2 = scmp.lt.s32.totalorder %s5976_s10, %s5976_s10 }
 0x5b8   :  { %5450 = vmatpush1.bf16.msra.mxu1 %v5449_v14  ;;  %p5983_p3 = por %p5982_p2, %p5981_p1 }
 0x5b9   :  { %5451 = vmatprep.subr.bf16.mxu1 %v6003_v5 }
 0x5ba   :  { %p5984_p4 = pnand %p5983_p3, %p5977_p0 }
 0x5bb   :  { %v3894_v53 = vpop.f32.mrb[84].mxu0 }
 0x5bc   :  { %v5402_v60 = vpop.f32.mrb[85].mxu0 }
 0x5bd   :  { %v3897_v31 = vpop.f32.mrb[86].mxu0 }
 0x5be   :  { %v5452_v34 = vpack.c.bf16 %v3897_v31, %v3894_v53  ;;  %v5403_v35 = vpop.f32.mrb[87].mxu0 }
 0x5c0   :  { %5453 = vmatpush1.bf16.msra.mxu1 %v5452_v34 }
 0x5c1   :  { %5454 = vmatprep.subr.bf16.mxu1 %v6003_v5 }
 0x5c3   :  { %v3902_v4 = vpop.f32.mrb[88].mxu0 }
 0x5c4   :  { %v5406_v51 = vpop.f32.mrb[89].mxu0 }
 0x5c5   :  { %v3905_v20 = vpop.f32.mrb[90].mxu0 }
 0x5c6   :  { %v5455_v13 = vpack.c.bf16 %v3905_v20, %v3902_v4  ;;  %v5407_v0 = vpop.f32.mrb[91].mxu0 }
 0x5c8   :  { %5456 = vmatpush1.bf16.msra.mxu1 %v5455_v13 }
 0x5c9   :  { %5457 = vmatprep.subr.bf16.mxu1 %v6003_v5 }
 0x5cb   :  { %v3910_v56 = vpop.f32.mrb[92].mxu0 }
 0x5cc   :  { %v5410_v10 = vpop.f32.mrb[93].mxu0 }
 0x5cd   :  { %v3913_v9 = vpop.f32.mrb[94].mxu0 }
 0x5ce   :  { %v5458_v16 = vpack.c.bf16 %v3913_v9, %v3910_v56  ;;  %v5411_v24 = vpop.f32.mrb[95].mxu0 }
 0x5d0   :  { %5459 = vmatpush1.bf16.msra.mxu1 %v5458_v16 }
 0x5d1   :  { %5460 = vmatprep.subr.bf16.mxu1 %v6003_v5 }
 0x5d3   :  { %v3918_v43 = vpop.f32.mrb[96].mxu0 }
 0x5d4   :  { %v5414_v36 = vpop.f32.mrb[97].mxu0 }
 0x5d5   :  { %v3921_v21 = vpop.f32.mrb[98].mxu0 }
 0x5d6   :  { %v5461_v38 = vpack.c.bf16 %v3921_v21, %v3918_v43  ;;  %v5415_v50 = vpop.f32.mrb[99].mxu0 }
 0x5d8   :  { %5462 = vmatpush1.bf16.msra.mxu1 %v5461_v38 }
 0x5d9   :  { %5463 = vmatprep.subr.bf16.mxu1 %v6003_v5 }
 0x5db   :  { %v3926_v30 = vpop.f32.mrb[100].mxu0 }
 0x5dc   :  { %v5418_v40 = vpop.f32.mrb[101].mxu0 }
 0x5dd   :  { %v3929_v8 = vpop.f32.mrb[102].mxu0 }
 0x5de   :  { %v5464_v29 = vpack.c.bf16 %v3929_v8, %v3926_v30  ;;  %v5419_v3 = vpop.f32.mrb[103].mxu0 }
 0x5e0   :  { %5465 = vmatpush1.bf16.msra.mxu1 %v5464_v29 }
 0x5e1   :  { %5466 = vmatprep.subr.bf16.mxu1 %v6003_v5 }
 0x5e3   :  { %v3934_v7 = vpop.f32.mrb[104].mxu0 }
 0x5e4   :  { %v5422_v15 = vpop.f32.mrb[105].mxu0 }
 0x5e5   :  { %v3937_v22 = vpop.f32.mrb[106].mxu0 }
 0x5e6   :  { %v5467_v1 = vpack.c.bf16 %v3937_v22, %v3934_v7  ;;  %v5423_v63 = vpop.f32.mrb[107].mxu0 }
 0x5e8   :  { %5468 = vmatpush1.bf16.msra.mxu1 %v5467_v1 }
 0x5e9   :  { %5469 = vmatprep.subr.bf16.mxu1 %v6003_v5 }
 0x5eb   :  { %v3942_v55 = vpop.f32.mrb[108].mxu0 }
 0x5ec   :  { %v5426_v18 = vpop.f32.mrb[109].mxu0 }
 0x5ed   :  { %v3945_v27 = vpop.f32.mrb[110].mxu0 }
 0x5ee   :  { %v5470_v32 = vpack.c.bf16 %v3945_v27, %v3942_v55  ;;  %v5427_v26 = vpop.f32.mrb[111].mxu0 }
 0x5f0   :  { %5471 = vmatpush1.bf16.msra.mxu1 %v5470_v32 }
 0x5f1   :  { %5472 = vmatprep.subr.bf16.mxu1 %v6003_v5 }
 0x5f3   :  { %v3950_v46 = vpop.f32.mrb[112].mxu0 }
 0x5f4   :  { %v5430_v28 = vpop.f32.mrb[113].mxu0 }
 0x5f5   :  { %v3953_v61 = vpop.f32.mrb[114].mxu0 }
 0x5f6   :  { %v5473_v62 = vpack.c.bf16 %v3953_v61, %v3950_v46  ;;  %v5431_v6 = vpop.f32.mrb[115].mxu0 }
 0x5f8   :  { %5474 = vmatpush1.bf16.msra.mxu1 %v5473_v62 }
 0x5f9   :  { %5475 = vmatprep.subr.bf16.mxu1 %v6003_v5 }
 0x5fb   :  { %v3958_v23 = vpop.f32.mrb[116].mxu0 }
 0x5fc   :  { %v5434_v19 = vpop.f32.mrb[117].mxu0 }
 0x5fd   :  { %v3961_v48 = vpop.f32.mrb[118].mxu0 }
 0x5fe   :  { %v5476_v45 = vpack.c.bf16 %v3961_v48, %v3958_v23  ;;  %v5435_v25 = vpop.f32.mrb[119].mxu0 }
 0x600   :  { %5477 = vmatpush1.bf16.msra.mxu1 %v5476_v45 }
 0x601   :  { %5478 = vmatprep.subr.bf16.mxu1 %v6003_v5 }
 0x603   :  { %v3966_v39 = vpop.f32.mrb[120].mxu0 }
 0x604   :  { %v5438_v41 = vpop.f32.mrb[121].mxu0 }
 0x605   :  { %v3969_v11 = vpop.f32.mrb[122].mxu0 }
 0x606   :  { %v5479_v12 = vpack.c.bf16 %v3969_v11, %v3966_v39  ;;  %v5439_v49 = vpop.f32.mrb[123].mxu0 }
 0x608   :  { %5480 = vmatpush1.bf16.msra.mxu1 %v5479_v12 }
 0x609   :  { %5440 = vmatprep.subr.bf16.mxu1 %v6001_v57 }
 0x60b   :  { %4073 = vmatmul.mubr.f32.vlgmr.msra.gmra.mrb[132].mxu1 %v3995_v42 }
 0x60c   :  { %5444 = vmatprep.mubr.msk.bf16.mxu1 %vm6002_vm4, %v6001_v57  ;;  %5441 = vmatpush3.bf16.msra.mxu1 %v5970_v17 }
 0x60d   :  { %5442 = vmatprep.subr.bf16.mxu1 %v6001_v57 }
 0x610   :  { %5443 = vmatpush3.bf16.msra.mxu1 %v5971_v52 }
 0x6de   :  { %v4074_v54 = vpop.f32.mrb[132].mxu1 }
 0x6df   :  { %v4075_v44 = vadd.f32 %v4473_v59, %v4074_v54  ;;  %v4076_v5 = vpop.f32.mrb[133].mxu1 }
 0x6e1   :  { %v4078_v2 = vmax.f32 %v4075_v44, 0.0 }
 0x6e3   :  { %v4079_v58 = vpack.c.bf16 %v4078_v2, %v4078_v2 }
 0x6e5   :  { %5445 = vmatmul.mubr.msk.bf16.vlgmr.msra.gmra.mrb[136].mxu1 %vm1880_vm5, %v4079_v58 }
 0x7b8   :  { %v4140_v33 = vpop.f32.mrb[136].mxu1 }
 0x7b9   :  { %v4141_v14 = vadd.f32 %v4475_v37, %v4140_v33  ;;  %v5446_v47 = vpop.f32.mrb[137].mxu1 }
 0x7ba   :  { %v4143_v57 = vpop.f32.mrb[138].mxu1 }
 0x7bb   :  { %4146 = vmax.xlane.f32.xlu0 %v4141_v14  ;;  %v5447_v53 = vpop.f32.mrb[139].mxu1 }
 0x848   :  { %v4147_v60 = vpop.xlane.xlu0 %4146 }
 0x849   :  { %v4148_v31 = vsub.f32 %v4141_v14, %v4147_v60 }
 0x84b   :  { %v4149_v34 = vmul.f32 1.442695, %v4148_v31 }
 0x84d   :  { %5972 = vpow2.f32 %v4149_v34 }
 0x857   :  { %v5973_v35 = vpop.eup %5972 }
 0x858   :  { %4151 = vadd.xlane.f32.xlu1 %v5973_v35 }
 0x8e5   :  { %v4152_v4 = vpop.xlane.xlu1 %4151 }
 0x8e6   :  { %5974 = vlog2.f32 %v4152_v4 }
 0x8f0   :  { %v5975_v51 = vpop.eup %5974 }
 0x8f1   :  { %v4154_v20 = vmul.f32 0.6931472, %v5975_v51 }
 0x8f3   :  { %v4155_v13 = vsub.f32 %v4148_v31, %v4154_v20 }
 0x8f5   :  { %4156 = vst [vmem:[#allocation2] sm:$0xff] %v4155_v13 }
 0x8f6   :  { %5987 = shalt.err (!%p5984_p4)
}
 0x8f7   :  { %s5988_s0 = scalar_lea.hbm %s7563_s11, 128 }
 0x8f8   :  { %p5989_p5 = scmp.ne.s32.totalorder %s7563_s11, %s5988_s0  ;;  %p5992_p6 = scmp.lt.u32.totalorder %s5988_s0, %s7563_s11 }
 0x8fa   :  { %p5994_p7 = pnand %p5992_p6, %p5989_p5 }
 0x8fc   :  { %5997 = shalt.err (!%p5994_p7)
}
 0x8fd   :  { %4166 = dma.vmem_to_hbm [thread:$0]  %s4164_s9, 128, %s7563_s11, [#allocation3]  }
 0x8fe   :  { %5998 = dma.done.wait [#allocation3], 128  }
 0x8ff   :  { %5999 = vsyncadd [#allocation3], 4294967168 }
 0x900   :  { %4170 = vsyncpa [#allocation3], 1 }

</bundles_post_ra>
